<compile_context>
chip_gen: v6e
topology: v6e:2x2x1
jax: 0.10.0
libtpu: 0.0.40
codegen_flags: <defaults>
</compile_context>

<pallas_src>
import functools

import jax
import jax.numpy as jnp
from jax import lax
from jax.experimental import pallas as pl
from jax.experimental.pallas import tpu as pltpu


def _round_up(x, m):
    return ((x + m - 1) // m) * m


def _choose_b_tile(b_s, seq, target_rows=256):
    """Largest divisor of b_s with b_tile*seq <= target_rows, but keep >= 2
    grid steps when b_s >= 2 so megacore sharding has work for both cores."""
    divs = [d for d in range(1, b_s + 1) if b_s % d == 0]
    fit = [d for d in divs if d * seq <= target_rows] or [1]
    b_tile = max(fit)
    if b_s > 1 and b_s // b_tile < 2:
        smaller = [d for d in fit if b_s // d >= 2]
        if smaller:
            b_tile = max(smaller)
    return b_tile


# ----------------------------------------------------------------------------
# Fused MHA kernel: one tile of B_TILE batch elements per grid step
#   q = xq @ Wq + bq ; k = xk @ Wk + bk ; v = xv @ Wv + bv      (rows = bt*n)
#   per head: pv_h = softmax((q_h * scale) @ k_h^T) @ v_h       (batched)
#   o = concat_h(pv_h) @ Wo + bo                                (one matmul)
# ----------------------------------------------------------------------------
def _mha_kernel(xq_ref, xk_ref, xv_ref,
                wq_ref, wk_ref, wv_ref, wo_ref,
                bq_ref, bk_ref, bv_ref, bo_ref,
                o_ref, *, h, d_k, d_v, scale):
    bt, nq, d_model = xq_ref.shape
    _, nk, _ = xk_ref.shape
    d_out_p = o_ref.shape[-1]

    # Flatten the batch tile so the projection matmuls see M = bt*n rows.
    xq = xq_ref[...].reshape(bt * nq, d_model)
    xk = xk_ref[...].reshape(bt * nk, d_model)
    xv = xv_ref[...].reshape(bt * nk, d_model)

    # Fused projections: bf16 operands, f32 MXU accumulation, f32 bias add.
    q = jnp.dot(xq, wq_ref[...], preferred_element_type=jnp.float32) + bq_ref[...]
    k = jnp.dot(xk, wk_ref[...], preferred_element_type=jnp.float32) + bk_ref[...]
    v = jnp.dot(xv, wv_ref[...], preferred_element_type=jnp.float32) + bv_ref[...]

    # Fold 1/sqrt(d_k) into q once; drop operands back to bf16 for the
    # attention matmuls (softmax math stays f32).
    qb = (q * jnp.float32(scale)).astype(jnp.bfloat16).reshape(bt, nq, h * d_k)
    kb = k.astype(jnp.bfloat16).reshape(bt, nk, h * d_k)
    vb = v.astype(jnp.bfloat16).reshape(bt, nk, h * d_v)

    # TODO(synk): for large h / per-head working sets switch this static unroll
    #             to lax.fori_loop(..., unroll=True) or a grid axis to bound
    #             vreg live ranges.
    pv_heads = []
    for hh in range(h):
        qh = qb[:, :, hh * d_k:(hh + 1) * d_k]          # (bt, nq, d_k)
        kh = kb[:, :, hh * d_k:(hh + 1) * d_k]          # (bt, nk, d_k)
        vh = vb[:, :, hh * d_v:(hh + 1) * d_v]          # (bt, nk, d_v)

        # NT matmul batched over the batch tile (no explicit k transpose).
        s = lax.dot_general(qh, kh, (((2,), (2,)), ((0,), (0,))),
                            preferred_element_type=jnp.float32)    # (bt, nq, nk)

        # Numerically-stable softmax over keys, f32.
        s = s - jnp.max(s, axis=-1, keepdims=True)
        p = jnp.exp(s)
        p = p * pl.reciprocal(jnp.sum(p, axis=-1, keepdims=True), approx=True)

        pv_heads.append(
            lax.dot_general(p.astype(jnp.bfloat16), vh,
                            (((2,), (1,)), ((0,), (0,))),
                            preferred_element_type=jnp.float32))   # (bt, nq, d_v)

    # fc_o hoisted out of the head loop: ONE K = h*d_v matmul, lane-dense out.
    pv_all = jnp.concatenate(pv_heads, axis=-1).reshape(bt * nq, h * d_v)
    out = jnp.dot(pv_all.astype(jnp.bfloat16), wo_ref[...],
                  preferred_element_type=jnp.float32) + bo_ref[...]
    o_ref[...] = out.reshape(bt, nq, d_out_p).astype(o_ref.dtype)


# ----------------------------------------------------------------------------
# Module wrapper
# ----------------------------------------------------------------------------
class ScaledDotProductAttentionPallas:
    """Eval-mode ScaledDotProductAttention; forward fused into one Pallas kernel."""

    def __init__(self, d_model, d_k, d_v, h, d_out, key, dropout=0.1):
        self.d_model, self.d_k, self.d_v, self.h, self.d_out = d_model, d_k, d_v, h, d_out
        self.d_out_pad = _round_up(d_out, 128)   # lane-dense output stores
        k1, k2, k3, k4 = jax.random.split(key, 4)
        std = 0.001  # nn.init.normal_(weight, std=0.001); bias = 0
        # stored (d_in, d_out) so the kernel does x @ W directly; bf16 operands
        self.wq = (jax.random.normal(k1, (d_model, h * d_k), jnp.float32) * std).astype(jnp.bfloat16)
        self.wk = (jax.random.normal(k2, (d_model, h * d_k), jnp.float32) * std).astype(jnp.bfloat16)
        self.wv = (jax.random.normal(k3, (d_model, h * d_v), jnp.float32) * std).astype(jnp.bfloat16)
        wo = (jax.random.normal(k4, (h * d_v, d_out), jnp.float32) * std).astype(jnp.bfloat16)
        # zero-pad fc_o to a multiple of 128 lanes; wrapper strips the padding.
        self.wo = jnp.zeros((h * d_v, self.d_out_pad), jnp.bfloat16).at[:, :d_out].set(wo)
        # biases kept f32 (added after the f32-accumulated matmul)
        self.bq = jnp.zeros((1, h * d_k), jnp.float32)
        self.bk = jnp.zeros((1, h * d_k), jnp.float32)
        self.bv = jnp.zeros((1, h * d_v), jnp.float32)
        self.bo = jnp.zeros((1, self.d_out_pad), jnp.float32)

    def __call__(self, queries, keys, values, attention_mask=None, attention_weights=None):
        if attention_mask is not None or attention_weights is not None:
            # TODO(synk): optional attention_mask / attention_weights not implemented.
            raise NotImplementedError("attention_mask / attention_weights not supported")

        b_s, nq, d_model = queries.shape
        nk = keys.shape[1]
        h, d_k, d_v = self.h, self.d_k, self.d_v
        d_out, d_out_pad = self.d_out, self.d_out_pad

        b_tile = _choose_b_tile(b_s, max(nq, nk))
        grid = (b_s // b_tile,)

        kernel = functools.partial(_mha_kernel, h=h, d_k=d_k, d_v=d_v,
                                   scale=1.0 / (d_k ** 0.5))

        out = pl.pallas_call(
            kernel,
            out_shape=jax.ShapeDtypeStruct((b_s, nq, d_out_pad), queries.dtype),
            grid=grid,
            in_specs=[
                # activations: B_TILE batch elements per grid step
                pl.BlockSpec((b_tile, nq, d_model), lambda b: (b, 0, 0)),
                pl.BlockSpec((b_tile, nk, d_model), lambda b: (b, 0, 0)),
                pl.BlockSpec((b_tile, nk, d_model), lambda b: (b, 0, 0)),
                # weights/biases: constant block index -> fetched once, VMEM-resident
                # TODO(synk): pipeline_mode=pl.Buffered(1) here would halve their
                #             double-buffered VMEM footprint at production d_model.
                pl.BlockSpec((d_model, h * d_k), lambda b: (0, 0)),
                pl.BlockSpec((d_model, h * d_k), lambda b: (0, 0)),
                pl.BlockSpec((d_model, h * d_v), lambda b: (0, 0)),
                pl.BlockSpec((h * d_v, d_out_pad), lambda b: (0, 0)),
                pl.BlockSpec((1, h * d_k), lambda b: (0, 0)),
                pl.BlockSpec((1, h * d_k), lambda b: (0, 0)),
                pl.BlockSpec((1, h * d_v), lambda b: (0, 0)),
                pl.BlockSpec((1, d_out_pad), lambda b: (0, 0)),
            ],
            out_specs=pl.BlockSpec((b_tile, nq, d_out_pad), lambda b: (b, 0, 0)),
            compiler_params=pltpu.CompilerParams(
                dimension_semantics=("parallel",)),
        )(queries.astype(jnp.bfloat16),
          keys.astype(jnp.bfloat16),
          values.astype(jnp.bfloat16),
          self.wq, self.wk, self.wv, self.wo,
          self.bq, self.bk, self.bv, self.bo)

        return out[..., :d_out] if d_out_pad != d_out else out


# Pure-JAX f32 reference computed from the same bf16-quantized weights and
# activations the kernel consumes, so the comparison isolates kernel error
# (accumulation order, approx reciprocal) rather than bf16 quantization.
def reference_forward(mod, queries, keys, values):
    b_s, nq, _ = queries.shape
    nk = keys.shape[1]
    h, d_k, d_v, d_out = mod.h, mod.d_k, mod.d_v, mod.d_out
    f32 = jnp.float32
    xq = queries.astype(jnp.bfloat16).astype(f32)
    xk = keys.astype(jnp.bfloat16).astype(f32)
    xv = values.astype(jnp.bfloat16).astype(f32)
    wq, wk, wv, wo = (w.astype(f32) for w in (mod.wq, mod.wk, mod.wv, mod.wo))
    with jax.default_matmul_precision("highest"):
        q = (xq @ wq + mod.bq[0]).reshape(b_s, nq, h, d_k).transpose(0, 2, 1, 3)
        k = (xk @ wk + mod.bk[0]).reshape(b_s, nk, h, d_k).transpose(0, 2, 3, 1)
        v = (xv @ wv + mod.bv[0]).reshape(b_s, nk, h, d_v).transpose(0, 2, 1, 3)
        att = jnp.matmul(q, k) / jnp.sqrt(f32(d_k))
        att = jax.nn.softmax(att, axis=-1)
        out = jnp.matmul(att, v).transpose(0, 2, 1, 3).reshape(b_s, nq, h * d_v)
        out = out @ wo + mod.bo[0]
    return out[..., :d_out]


if __name__ == "__main__":
    key = jax.random.PRNGKey(0)
    k_params, k_q, k_k, k_v = jax.random.split(key, 4)

    b_s, nq, nk = 4, 8, 8
    d_model, d_k, d_v, h, d_out = 32, 16, 16, 4, 32

    mod = ScaledDotProductAttentionPallas(d_model, d_k, d_v, h, d_out, k_params)

    queries = jax.random.normal(k_q, (b_s, nq, d_model), jnp.float32)
    keys = jax.random.normal(k_k, (b_s, nk, d_model), jnp.float32)
    values = jax.random.normal(k_v, (b_s, nk, d_model), jnp.float32)

    out = jax.block_until_ready(mod(queries, keys, values))
    assert out.shape == (b_s, nq, d_out)

    ref = reference_forward(mod, queries, keys, values)
    max_err = float(jnp.max(jnp.abs(out - ref)))
    # bf16 operands + approx reciprocal vs. an f32 reference built from the
    # same bf16-quantized parameters: ~1% relative, sub-1e-6 absolute here.
    assert jnp.allclose(out, ref, atol=2e-6, rtol=2e-2), max_err

    print("KERNEL_OK")
</pallas_src>

<mosaic_0001>
module attributes {stable_mosaic.version = 11 : i64} {
  func.func @_mha_kernel(%arg0: i32, %arg1: memref<2x8x32xbf16, #tpu.memory_space<vmem>>, %arg2: memref<2x8x32xbf16, #tpu.memory_space<vmem>>, %arg3: memref<2x8x32xbf16, #tpu.memory_space<vmem>>, %arg4: memref<32x64xbf16, #tpu.memory_space<vmem>>, %arg5: memref<32x64xbf16, #tpu.memory_space<vmem>>, %arg6: memref<32x64xbf16, #tpu.memory_space<vmem>>, %arg7: memref<64x128xbf16, #tpu.memory_space<vmem>>, %arg8: memref<1x64xf32, #tpu.memory_space<vmem>>, %arg9: memref<1x64xf32, #tpu.memory_space<vmem>>, %arg10: memref<1x64xf32, #tpu.memory_space<vmem>>, %arg11: memref<1x128xf32, #tpu.memory_space<vmem>>, %arg12: memref<2x8x128xf32, #tpu.memory_space<vmem>>) attributes {dimension_semantics = [#tpu.dimension_semantics<parallel>], iteration_bounds = array<i64: 2>, scalar_prefetch = 0 : i64, scratch_operands = 0 : i64, tpu.core_type = #tpu.core_type<tc>, window_params = [{transform_indices = @transform_0, window_bounds = array<i64: 2, 8, 32>}, {transform_indices = @transform_1, window_bounds = array<i64: 2, 8, 32>}, {transform_indices = @transform_2, window_bounds = array<i64: 2, 8, 32>}, {pipeline_mode = #tpu.pipeline_mode<synchronous>, transform_indices = @transform_3, window_bounds = array<i64: 32, 64>}, {pipeline_mode = #tpu.pipeline_mode<synchronous>, transform_indices = @transform_4, window_bounds = array<i64: 32, 64>}, {pipeline_mode = #tpu.pipeline_mode<synchronous>, transform_indices = @transform_5, window_bounds = array<i64: 32, 64>}, {pipeline_mode = #tpu.pipeline_mode<synchronous>, transform_indices = @transform_6, window_bounds = array<i64: 64, 128>}, {pipeline_mode = #tpu.pipeline_mode<synchronous>, transform_indices = @transform_7, window_bounds = array<i64: 1, 64>}, {pipeline_mode = #tpu.pipeline_mode<synchronous>, transform_indices = @transform_8, window_bounds = array<i64: 1, 64>}, {pipeline_mode = #tpu.pipeline_mode<synchronous>, transform_indices = @transform_9, window_bounds = array<i64: 1, 64>}, {pipeline_mode = #tpu.pipeline_mode<synchronous>, transform_indices = @transform_10, window_bounds = array<i64: 1, 128>}, {transform_indices = @transform_11, window_bounds = array<i64: 2, 8, 128>}]} {
    %c0 = arith.constant 0 : index
    %c0_0 = arith.constant 0 : index
    %c0_1 = arith.constant 0 : index
    %0 = vector.load %arg1[%c0, %c0_0, %c0_1] : memref<2x8x32xbf16, #tpu.memory_space<vmem>>, vector<2x8x32xbf16>
    %1 = vector.shape_cast %0 : vector<2x8x32xbf16> to vector<16x32xbf16>
    %c0_2 = arith.constant 0 : index
    %c0_3 = arith.constant 0 : index
    %c0_4 = arith.constant 0 : index
    %2 = vector.load %arg2[%c0_2, %c0_3, %c0_4] : memref<2x8x32xbf16, #tpu.memory_space<vmem>>, vector<2x8x32xbf16>
    %3 = vector.shape_cast %2 : vector<2x8x32xbf16> to vector<16x32xbf16>
    %c0_5 = arith.constant 0 : index
    %c0_6 = arith.constant 0 : index
    %c0_7 = arith.constant 0 : index
    %4 = vector.load %arg3[%c0_5, %c0_6, %c0_7] : memref<2x8x32xbf16, #tpu.memory_space<vmem>>, vector<2x8x32xbf16>
    %5 = vector.shape_cast %4 : vector<2x8x32xbf16> to vector<16x32xbf16>
    %c0_8 = arith.constant 0 : index
    %c0_9 = arith.constant 0 : index
    %6 = vector.load %arg4[%c0_8, %c0_9] : memref<32x64xbf16, #tpu.memory_space<vmem>>, vector<32x64xbf16>
    %cst = arith.constant dense<0.000000e+00> : vector<16x64xf32>
    %7 = tpu.matmul %1, %6, %cst {dimension_numbers = #tpu.dot_dimension_numbers<[1], [0], [0], [1], [0, 0, 1, 1], [], []>} : vector<16x32xbf16>, vector<32x64xbf16>, vector<16x64xf32> -> vector<16x64xf32>
    %c0_10 = arith.constant 0 : index
    %c0_11 = arith.constant 0 : index
    %8 = vector.load %arg8[%c0_10, %c0_11] : memref<1x64xf32, #tpu.memory_space<vmem>>, vector<1x64xf32>
    %9 = vector.broadcast %8 : vector<1x64xf32> to vector<16x64xf32>
    %10 = arith.addf %7, %9 : vector<16x64xf32>
    %c0_12 = arith.constant 0 : index
    %c0_13 = arith.constant 0 : index
    %11 = vector.load %arg5[%c0_12, %c0_13] : memref<32x64xbf16, #tpu.memory_space<vmem>>, vector<32x64xbf16>
    %cst_14 = arith.constant dense<0.000000e+00> : vector<16x64xf32>
    %12 = tpu.matmul %3, %11, %cst_14 {dimension_numbers = #tpu.dot_dimension_numbers<[1], [0], [0], [1], [0, 0, 1, 1], [], []>} : vector<16x32xbf16>, vector<32x64xbf16>, vector<16x64xf32> -> vector<16x64xf32>
    %c0_15 = arith.constant 0 : index
    %c0_16 = arith.constant 0 : index
    %13 = vector.load %arg9[%c0_15, %c0_16] : memref<1x64xf32, #tpu.memory_space<vmem>>, vector<1x64xf32>
    %14 = vector.broadcast %13 : vector<1x64xf32> to vector<16x64xf32>
    %15 = arith.addf %12, %14 : vector<16x64xf32>
    %c0_17 = arith.constant 0 : index
    %c0_18 = arith.constant 0 : index
    %16 = vector.load %arg6[%c0_17, %c0_18] : memref<32x64xbf16, #tpu.memory_space<vmem>>, vector<32x64xbf16>
    %cst_19 = arith.constant dense<0.000000e+00> : vector<16x64xf32>
    %17 = tpu.matmul %5, %16, %cst_19 {dimension_numbers = #tpu.dot_dimension_numbers<[1], [0], [0], [1], [0, 0, 1, 1], [], []>} : vector<16x32xbf16>, vector<32x64xbf16>, vector<16x64xf32> -> vector<16x64xf32>
    %c0_20 = arith.constant 0 : index
    %c0_21 = arith.constant 0 : index
    %18 = vector.load %arg10[%c0_20, %c0_21] : memref<1x64xf32, #tpu.memory_space<vmem>>, vector<1x64xf32>
    %19 = vector.broadcast %18 : vector<1x64xf32> to vector<16x64xf32>
    %20 = arith.addf %17, %19 : vector<16x64xf32>
    %cst_22 = arith.constant 2.500000e-01 : f32
    %21 = vector.broadcast %cst_22 : f32 to vector<16x64xf32>
    %22 = arith.mulf %10, %21 : vector<16x64xf32>
    %23 = arith.truncf %22 : vector<16x64xf32> to vector<16x64xbf16>
    %24 = vector.shape_cast %23 : vector<16x64xbf16> to vector<2x8x64xbf16>
    %25 = arith.truncf %15 : vector<16x64xf32> to vector<16x64xbf16>
    %26 = vector.shape_cast %25 : vector<16x64xbf16> to vector<2x8x64xbf16>
    %27 = arith.truncf %20 : vector<16x64xf32> to vector<16x64xbf16>
    %28 = vector.shape_cast %27 : vector<16x64xbf16> to vector<2x8x64xbf16>
    %29 = vector.extract_strided_slice %24 {offsets = [0, 0, 0], sizes = [2, 8, 16], strides = [1, 1, 1]} : vector<2x8x64xbf16> to vector<2x8x16xbf16>
    %30 = vector.extract_strided_slice %26 {offsets = [0, 0, 0], sizes = [2, 8, 16], strides = [1, 1, 1]} : vector<2x8x64xbf16> to vector<2x8x16xbf16>
    %31 = vector.extract_strided_slice %28 {offsets = [0, 0, 0], sizes = [2, 8, 16], strides = [1, 1, 1]} : vector<2x8x64xbf16> to vector<2x8x16xbf16>
    %cst_23 = arith.constant dense<0.000000e+00> : vector<2x8x8xf32>
    %32 = tpu.matmul %29, %30, %cst_23 {dimension_numbers = #tpu.dot_dimension_numbers<[2], [2], [1], [1], [0, 0, 0, 1, 1, 1], [0], [0]>} : vector<2x8x16xbf16>, vector<2x8x16xbf16>, vector<2x8x8xf32> -> vector<2x8x8xf32>
    %cst_24 = arith.constant dense<0xFF800000> : vector<2x8xf32>
    %33 = vector.multi_reduction <maximumf>, %32, %cst_24 [2] : vector<2x8x8xf32> to vector<2x8xf32>
    %34 = vector.shape_cast %33 : vector<2x8xf32> to vector<2x8x1xf32>
    %35 = vector.broadcast %34 : vector<2x8x1xf32> to vector<2x8x8xf32>
    %36 = arith.subf %32, %35 : vector<2x8x8xf32>
    %37 = math.exp %36 : vector<2x8x8xf32>
    %cst_25 = arith.constant dense<0.000000e+00> : vector<2x8xf32>
    %38 = vector.multi_reduction <add>, %37, %cst_25 [2] : vector<2x8x8xf32> to vector<2x8xf32>
    %39 = vector.shape_cast %38 : vector<2x8xf32> to vector<2x8x1xf32>
    %40 = tpu.reciprocal %39 {approx = true} : vector<2x8x1xf32> -> vector<2x8x1xf32>
    %41 = vector.broadcast %40 : vector<2x8x1xf32> to vector<2x8x8xf32>
    %42 = arith.mulf %37, %41 : vector<2x8x8xf32>
    %43 = arith.truncf %42 : vector<2x8x8xf32> to vector<2x8x8xbf16>
    %cst_26 = arith.constant dense<0.000000e+00> : vector<2x8x16xf32>
    %44 = tpu.matmul %43, %31, %cst_26 {dimension_numbers = #tpu.dot_dimension_numbers<[2], [1], [1], [2], [0, 0, 0, 1, 1, 2], [0], [0]>} : vector<2x8x8xbf16>, vector<2x8x16xbf16>, vector<2x8x16xf32> -> vector<2x8x16xf32>
    %45 = vector.extract_strided_slice %24 {offsets = [0, 0, 16], sizes = [2, 8, 16], strides = [1, 1, 1]} : vector<2x8x64xbf16> to vector<2x8x16xbf16>
    %46 = vector.extract_strided_slice %26 {offsets = [0, 0, 16], sizes = [2, 8, 16], strides = [1, 1, 1]} : vector<2x8x64xbf16> to vector<2x8x16xbf16>
    %47 = vector.extract_strided_slice %28 {offsets = [0, 0, 16], sizes = [2, 8, 16], strides = [1, 1, 1]} : vector<2x8x64xbf16> to vector<2x8x16xbf16>
    %cst_27 = arith.constant dense<0.000000e+00> : vector<2x8x8xf32>
    %48 = tpu.matmul %45, %46, %cst_27 {dimension_numbers = #tpu.dot_dimension_numbers<[2], [2], [1], [1], [0, 0, 0, 1, 1, 1], [0], [0]>} : vector<2x8x16xbf16>, vector<2x8x16xbf16>, vector<2x8x8xf32> -> vector<2x8x8xf32>
    %cst_28 = arith.constant dense<0xFF800000> : vector<2x8xf32>
    %49 = vector.multi_reduction <maximumf>, %48, %cst_28 [2] : vector<2x8x8xf32> to vector<2x8xf32>
    %50 = vector.shape_cast %49 : vector<2x8xf32> to vector<2x8x1xf32>
    %51 = vector.broadcast %50 : vector<2x8x1xf32> to vector<2x8x8xf32>
    %52 = arith.subf %48, %51 : vector<2x8x8xf32>
    %53 = math.exp %52 : vector<2x8x8xf32>
    %cst_29 = arith.constant dense<0.000000e+00> : vector<2x8xf32>
    %54 = vector.multi_reduction <add>, %53, %cst_29 [2] : vector<2x8x8xf32> to vector<2x8xf32>
    %55 = vector.shape_cast %54 : vector<2x8xf32> to vector<2x8x1xf32>
    %56 = tpu.reciprocal %55 {approx = true} : vector<2x8x1xf32> -> vector<2x8x1xf32>
    %57 = vector.broadcast %56 : vector<2x8x1xf32> to vector<2x8x8xf32>
    %58 = arith.mulf %53, %57 : vector<2x8x8xf32>
    %59 = arith.truncf %58 : vector<2x8x8xf32> to vector<2x8x8xbf16>
    %cst_30 = arith.constant dense<0.000000e+00> : vector<2x8x16xf32>
    %60 = tpu.matmul %59, %47, %cst_30 {dimension_numbers = #tpu.dot_dimension_numbers<[2], [1], [1], [2], [0, 0, 0, 1, 1, 2], [0], [0]>} : vector<2x8x8xbf16>, vector<2x8x16xbf16>, vector<2x8x16xf32> -> vector<2x8x16xf32>
    %61 = vector.extract_strided_slice %24 {offsets = [0, 0, 32], sizes = [2, 8, 16], strides = [1, 1, 1]} : vector<2x8x64xbf16> to vector<2x8x16xbf16>
    %62 = vector.extract_strided_slice %26 {offsets = [0, 0, 32], sizes = [2, 8, 16], strides = [1, 1, 1]} : vector<2x8x64xbf16> to vector<2x8x16xbf16>
    %63 = vector.extract_strided_slice %28 {offsets = [0, 0, 32], sizes = [2, 8, 16], strides = [1, 1, 1]} : vector<2x8x64xbf16> to vector<2x8x16xbf16>
    %cst_31 = arith.constant dense<0.000000e+00> : vector<2x8x8xf32>
    %64 = tpu.matmul %61, %62, %cst_31 {dimension_numbers = #tpu.dot_dimension_numbers<[2], [2], [1], [1], [0, 0, 0, 1, 1, 1], [0], [0]>} : vector<2x8x16xbf16>, vector<2x8x16xbf16>, vector<2x8x8xf32> -> vector<2x8x8xf32>
    %cst_32 = arith.constant dense<0xFF800000> : vector<2x8xf32>
    %65 = vector.multi_reduction <maximumf>, %64, %cst_32 [2] : vector<2x8x8xf32> to vector<2x8xf32>
    %66 = vector.shape_cast %65 : vector<2x8xf32> to vector<2x8x1xf32>
    %67 = vector.broadcast %66 : vector<2x8x1xf32> to vector<2x8x8xf32>
    %68 = arith.subf %64, %67 : vector<2x8x8xf32>
    %69 = math.exp %68 : vector<2x8x8xf32>
    %cst_33 = arith.constant dense<0.000000e+00> : vector<2x8xf32>
    %70 = vector.multi_reduction <add>, %69, %cst_33 [2] : vector<2x8x8xf32> to vector<2x8xf32>
    %71 = vector.shape_cast %70 : vector<2x8xf32> to vector<2x8x1xf32>
    %72 = tpu.reciprocal %71 {approx = true} : vector<2x8x1xf32> -> vector<2x8x1xf32>
    %73 = vector.broadcast %72 : vector<2x8x1xf32> to vector<2x8x8xf32>
    %74 = arith.mulf %69, %73 : vector<2x8x8xf32>
    %75 = arith.truncf %74 : vector<2x8x8xf32> to vector<2x8x8xbf16>
    %cst_34 = arith.constant dense<0.000000e+00> : vector<2x8x16xf32>
    %76 = tpu.matmul %75, %63, %cst_34 {dimension_numbers = #tpu.dot_dimension_numbers<[2], [1], [1], [2], [0, 0, 0, 1, 1, 2], [0], [0]>} : vector<2x8x8xbf16>, vector<2x8x16xbf16>, vector<2x8x16xf32> -> vector<2x8x16xf32>
    %77 = vector.extract_strided_slice %24 {offsets = [0, 0, 48], sizes = [2, 8, 16], strides = [1, 1, 1]} : vector<2x8x64xbf16> to vector<2x8x16xbf16>
    %78 = vector.extract_strided_slice %26 {offsets = [0, 0, 48], sizes = [2, 8, 16], strides = [1, 1, 1]} : vector<2x8x64xbf16> to vector<2x8x16xbf16>
    %79 = vector.extract_strided_slice %28 {offsets = [0, 0, 48], sizes = [2, 8, 16], strides = [1, 1, 1]} : vector<2x8x64xbf16> to vector<2x8x16xbf16>
    %cst_35 = arith.constant dense<0.000000e+00> : vector<2x8x8xf32>
    %80 = tpu.matmul %77, %78, %cst_35 {dimension_numbers = #tpu.dot_dimension_numbers<[2], [2], [1], [1], [0, 0, 0, 1, 1, 1], [0], [0]>} : vector<2x8x16xbf16>, vector<2x8x16xbf16>, vector<2x8x8xf32> -> vector<2x8x8xf32>
    %cst_36 = arith.constant dense<0xFF800000> : vector<2x8xf32>
    %81 = vector.multi_reduction <maximumf>, %80, %cst_36 [2] : vector<2x8x8xf32> to vector<2x8xf32>
    %82 = vector.shape_cast %81 : vector<2x8xf32> to vector<2x8x1xf32>
    %83 = vector.broadcast %82 : vector<2x8x1xf32> to vector<2x8x8xf32>
    %84 = arith.subf %80, %83 : vector<2x8x8xf32>
    %85 = math.exp %84 : vector<2x8x8xf32>
    %cst_37 = arith.constant dense<0.000000e+00> : vector<2x8xf32>
    %86 = vector.multi_reduction <add>, %85, %cst_37 [2] : vector<2x8x8xf32> to vector<2x8xf32>
    %87 = vector.shape_cast %86 : vector<2x8xf32> to vector<2x8x1xf32>
    %88 = tpu.reciprocal %87 {approx = true} : vector<2x8x1xf32> -> vector<2x8x1xf32>
    %89 = vector.broadcast %88 : vector<2x8x1xf32> to vector<2x8x8xf32>
    %90 = arith.mulf %85, %89 : vector<2x8x8xf32>
    %91 = arith.truncf %90 : vector<2x8x8xf32> to vector<2x8x8xbf16>
    %cst_38 = arith.constant dense<0.000000e+00> : vector<2x8x16xf32>
    %92 = tpu.matmul %91, %79, %cst_38 {dimension_numbers = #tpu.dot_dimension_numbers<[2], [1], [1], [2], [0, 0, 0, 1, 1, 2], [0], [0]>} : vector<2x8x8xbf16>, vector<2x8x16xbf16>, vector<2x8x16xf32> -> vector<2x8x16xf32>
    %93 = tpu.concatenate %44, %60, %76, %92 in 2 : vector<2x8x16xf32>, vector<2x8x16xf32>, vector<2x8x16xf32>, vector<2x8x16xf32> -> vector<2x8x64xf32>
    %94 = vector.shape_cast %93 : vector<2x8x64xf32> to vector<16x64xf32>
    %95 = arith.truncf %94 : vector<16x64xf32> to vector<16x64xbf16>
    %c0_39 = arith.constant 0 : index
    %c0_40 = arith.constant 0 : index
    %96 = vector.load %arg7[%c0_39, %c0_40] : memref<64x128xbf16, #tpu.memory_space<vmem>>, vector<64x128xbf16>
    %cst_41 = arith.constant dense<0.000000e+00> : vector<16x128xf32>
    %97 = tpu.matmul %95, %96, %cst_41 {dimension_numbers = #tpu.dot_dimension_numbers<[1], [0], [0], [1], [0, 0, 1, 1], [], []>} : vector<16x64xbf16>, vector<64x128xbf16>, vector<16x128xf32> -> vector<16x128xf32>
    %c0_42 = arith.constant 0 : index
    %c0_43 = arith.constant 0 : index
    %98 = vector.load %arg11[%c0_42, %c0_43] : memref<1x128xf32, #tpu.memory_space<vmem>>, vector<1x128xf32>
    %99 = vector.broadcast %98 : vector<1x128xf32> to vector<16x128xf32>
    %100 = arith.addf %97, %99 : vector<16x128xf32>
    %101 = vector.shape_cast %100 : vector<16x128xf32> to vector<2x8x128xf32>
    %c0_44 = arith.constant 0 : index
    %c0_45 = arith.constant 0 : index
    %c0_46 = arith.constant 0 : index
    %102 = vector.load %arg12[%c0_44, %c0_45, %c0_46] : memref<2x8x128xf32, #tpu.memory_space<vmem>>, vector<2x8x128xf32>
    tpu.vector_store %arg12[%c0_44, %c0_45, %c0_46], %101 {strides = array<i32>} : memref<2x8x128xf32, #tpu.memory_space<vmem>>, vector<2x8x128xf32>,
    return
  }
  func.func @transform_0(%arg0: i32) -> (i32, i32, i32) {
    %c0_i32 = arith.constant 0 : i32
    %c0_i32_0 = arith.constant 0 : i32
    %c0_i32_1 = arith.constant 0 : i32
    return %arg0, %c0_i32, %c0_i32_0 : i32, i32, i32
  }
  func.func @transform_1(%arg0: i32) -> (i32, i32, i32) {
    %c0_i32 = arith.constant 0 : i32
    %c0_i32_0 = arith.constant 0 : i32
    %c0_i32_1 = arith.constant 0 : i32
    return %arg0, %c0_i32, %c0_i32_0 : i32, i32, i32
  }
  func.func @transform_2(%arg0: i32) -> (i32, i32, i32) {
    %c0_i32 = arith.constant 0 : i32
    %c0_i32_0 = arith.constant 0 : i32
    %c0_i32_1 = arith.constant 0 : i32
    return %arg0, %c0_i32, %c0_i32_0 : i32, i32, i32
  }
  func.func @transform_3(%arg0: i32) -> (i32, i32) {
    %c0_i32 = arith.constant 0 : i32
    %c0_i32_0 = arith.constant 0 : i32
    %c0_i32_1 = arith.constant 0 : i32
    return %c0_i32, %c0_i32_0 : i32, i32
  }
  func.func @transform_4(%arg0: i32) -> (i32, i32) {
    %c0_i32 = arith.constant 0 : i32
    %c0_i32_0 = arith.constant 0 : i32
    %c0_i32_1 = arith.constant 0 : i32
    return %c0_i32, %c0_i32_0 : i32, i32
  }
  func.func @transform_5(%arg0: i32) -> (i32, i32) {
    %c0_i32 = arith.constant 0 : i32
    %c0_i32_0 = arith.constant 0 : i32
    %c0_i32_1 = arith.constant 0 : i32
    return %c0_i32, %c0_i32_0 : i32, i32
  }
  func.func @transform_6(%arg0: i32) -> (i32, i32) {
    %c0_i32 = arith.constant 0 : i32
    %c0_i32_0 = arith.constant 0 : i32
    %c0_i32_1 = arith.constant 0 : i32
    return %c0_i32, %c0_i32_0 : i32, i32
  }
  func.func @transform_7(%arg0: i32) -> (i32, i32) {
    %c0_i32 = arith.constant 0 : i32
    %c0_i32_0 = arith.constant 0 : i32
    %c0_i32_1 = arith.constant 0 : i32
    return %c0_i32, %c0_i32_0 : i32, i32
  }
  func.func @transform_8(%arg0: i32) -> (i32, i32) {
    %c0_i32 = arith.constant 0 : i32
    %c0_i32_0 = arith.constant 0 : i32
    %c0_i32_1 = arith.constant 0 : i32
    return %c0_i32, %c0_i32_0 : i32, i32
  }
  func.func @transform_9(%arg0: i32) -> (i32, i32) {
    %c0_i32 = arith.constant 0 : i32
    %c0_i32_0 = arith.constant 0 : i32
    %c0_i32_1 = arith.constant 0 : i32
    return %c0_i32, %c0_i32_0 : i32, i32
  }
  func.func @transform_10(%arg0: i32) -> (i32, i32) {
    %c0_i32 = arith.constant 0 : i32
    %c0_i32_0 = arith.constant 0 : i32
    %c0_i32_1 = arith.constant 0 : i32
    return %c0_i32, %c0_i32_0 : i32, i32
  }
  func.func @transform_11(%arg0: i32) -> (i32, i32, i32) {
    %c0_i32 = arith.constant 0 : i32
    %c0_i32_0 = arith.constant 0 : i32
    %c0_i32_1 = arith.constant 0 : i32
    return %arg0, %c0_i32, %c0_i32_0 : i32, i32, i32
  }
}

</mosaic_0001>

<bundles_post_ra>
// kernel: tpu_custom_call.1
= control target key start
LH: loop header
LB: loop body
LE: loop exit
PB: predicated region body
PF: predicated region fallthrough
CT: control target
= control target key end

     0   :  { %s3240_s0 = inlined_call_operand.hbm [shape: bf16[4,8,32], index: 0, kind: input, shape index: {}]   ;;  %s3241_s1 = inlined_call_operand.hbm [shape: bf16[4,8,32], index: 1, kind: input, shape index: {}]   ;;  %s3242_s2 = inlined_call_operand.hbm [shape: bf16[4,8,32], index: 2, kind: input, shape index: {}]   ;;  %s3243_s3 = inlined_call_operand.hbm [shape: bf16[32,64], index: 3, kind: input, shape index: {}]   ;;  %s3244_s4 = inlined_call_operand.hbm [shape: bf16[32,64], index: 4, kind: input, shape index: {}]   ;;  %s3245_s5 = inlined_call_operand.hbm [shape: bf16[32,64], index: 5, kind: input, shape index: {}]   ;;  %s3246_s6 = inlined_call_operand.hbm [shape: bf16[64,128], index: 6, kind: input, shape index: {}]   ;;  %s3247_s7 = inlined_call_operand.vmem [shape: f32[1,64], index: 7, kind: input, shape index: {}]   ;;  %s3248_s8 = inlined_call_operand.vmem [shape: f32[1,64], index: 8, kind: input, shape index: {}]   ;;  %s3249_s9 = inlined_call_operand.vmem [shape: f32[1,64], index: 9, kind: input, shape index: {}]   ;;  %s3250_s10 = inlined_call_operand.vmem [shape: f32[1,128], index: 10, kind: input, shape index: {}]   ;;  %s3251_s11 = inlined_call_operand.hbm [shape: f32[4,8,128], index: 11, kind: output, shape index: {}]  }
   0x1   :  { %3272 = sst [smem:[#allocation26_spill]] %s3241_s1 }
   0x2   :  { %3273 = sst [smem:[#allocation27_spill]] %s3243_s3 }
   0x3   :  { %3274 = sst [smem:[#allocation28_spill]] %s3245_s5 }
   0x4   :  { %3275 = sst [smem:[#allocation29_spill]] %s3251_s11 }
   0x5   :  { %16 = vsyncpa [#allocation3], 0 }
   0x6   :  { %18 = vsyncpa [#allocation3 + $0x1], 0 }
   0x7   :  { %19 = vsyncpa [#allocation6], 0 }
   0x8   :  { %21 = vsyncpa [#allocation6 + $0x1], 0 }
   0x9   :  { %22 = vsyncpa [#allocation9], 0 }
   0xa   :  { %23 = vsyncpa [#allocation12], 0 }
   0xb   :  { %24 = vsyncpa [#allocation4], 0 }
   0xc   :  { %26 = vsyncpa [#allocation4 + $0x1], 0  ;;  %s2721_s17 = smov 0   ;;  %s2723_s18 = smov 0  }
   0xd   :  { %s2725_s19 = smov 0   ;;  %s2727_s20 = smov 0  }
   0xe LB: > { %3276 = sst [smem:[#allocation20_spill]] %s2627_s17  ;;  %s2742_s21 = sadd.s32 4294967295, %s2639_s20   ;;  %s2639_s20 = sphi %s2727_s20, %s3312_s20   ;;  %s2635_s19 = sphi %s2725_s19, %s3316_s19   ;;  %s2631_s18 = sphi %s2723_s18, %s3315_s18   ;;  %s2627_s17 = sphi %s2721_s17, %s3314_s17  }
   0xf   : > { %3277 = sst [smem:[#allocation21_spill]] %s2639_s20  ;;  %s1945_s22 = sadd.s32 4294967294, %s2639_s20  }
  0x10   : > { %p52_p0 = scmp.ne.s32.totalorder %s2631_s18, %s2627_s17  ;;  %p3263_p1 = scmp.eq.s32.totalorder %s2742_s21, 0 }
  0x11   : > { %p296_p2 = scmp.eq.s32.totalorder %s2742_s21, 1  ;;  %p302_p3 = scmp.eq.s32.totalorder %s1945_s22, 1 }
  0x12   : > { %p2751_p4 = por %p3263_p1, %p52_p0  ;;  %p1946_p5 = scmp.ge.s32.totalorder %s2639_s20, 1 }
  0x13   : > { %p2756_p6 = por %p302_p3, %p52_p0  ;;  %p309_p7 = scmp.lt.s32.totalorder %s2639_s20, 3 }
  0x14   : > { %s3278_s23 = scalar_select %p2751_p4, 1, 0 }
  0x15   : > { %s3279_s24 = scalar_select %p2756_p6, 1, 0 }
  0x16   : > { %p2761_p8 = pnand %p1946_p5, %p309_p7  ;;  %s2641_s26 = smov [#allocation8]  }
  0x17   : > { %3280 = sst [smem:[#allocation22_spill]] %s3279_s24  ;;  %s321_s27 = sshll.u32 %s2641_s26, 4  ;;  %s322_s27 = int_to_ptr.vmem [resolvable:$true] %s321_s27 }
  0x18   : > { %s3281_s25 = scalar_select %p2761_p8, 1, 0 }
  0x19   : > { %p2230_p9 = pneg %p2761_p8  ;;  %s2642_s29 = smov [#allocation11]  }
  0x1a   : > { %s347_s30 = sshll.u32 %s2642_s29, 4  ;;  %s2386_s12 = scalar_lea.vmem %s322_s27, 256  ;;  %s348_s30 = int_to_ptr.vmem [resolvable:$true] %s347_s30 }
  0x1b   : > { %p2770_p11 = pnand %p2230_p9, %p3263_p1  ;;  %p2387_p13 = scmp.ne.s32.totalorder %s322_s27, %s2386_s12 }
  0x1c   : > { %p2394_p5 = scmp.lt.s32.totalorder %s322_s27, %s322_s27  ;;  %p2395_p7 = scmp.lt.s32.totalorder %s2386_s12, %s2386_s12 }
  0x1d   : > { %s3282_s28 = scalar_select %p2770_p11, 1, 0 }
  0x1e   : > { %p3264_p12 = pneg %p2770_p11  ;;  %p2396_p10 = por %p2395_p7, %p2394_p5 }
  0x20   : > { %p2389_p0 = pnand %p2387_p13, %p3264_p12 }
  0x22   : > { %p2390_p3 = pneg %p2389_p0 }
  0x24   : > { %p2397_p9 = pnand %p2396_p10, %p2390_p3 }
  0x26   : > { %2400 = shalt.err (!%p2397_p9)
}
  0x27   : > { %s3252_s13 = smov 64   ;;  %s3254_s14 = smov 4  }
  0x28   : > { %s3283_s3 = sld [smem:[#allocation27_spill]]  ;;  %s2412_s22 = scalar_lea.vmem %s348_s30, 256 }
  0x29   : > { %p2413_p13 = scmp.ne.s32.totalorder %s348_s30, %s2412_s22  ;;  %p2420_p10 = scmp.lt.s32.totalorder %s348_s30, %s348_s30 }
  0x2a   : > { %p2421_p3 = scmp.lt.s32.totalorder %s2412_s22, %s2412_s22 }
  0x2b   : > { %p2415_p0 = pnand %p2413_p13, %p3264_p12 }
  0x2c   : > { %p2422_p7 = por %p2421_p3, %p2420_p10 }
  0x2d   : > { %p2416_p5 = pneg %p2415_p0 }
  0x2e   : > { %2233 = dma.hbm_to_vmem [thread:$0]  (!%p2770_p11), %s3283_s3, 256, %s322_s27, [#allocation9], %s3252_s13, %s3252_s13, %s3254_s14  }
  0x2f   : > { %p2423_p9 = pnand %p2422_p7, %p2416_p5 }
  0x31   : > { %2426 = shalt.err (!%p2423_p9)
}
  0x32   : > { %s3284_s5 = sld [smem:[#allocation28_spill]]  ;;  %s2799_s27 = sadd.s32 1, %s2639_s20  }
  0x33   : > { %3285 = sst [smem:[#allocation23_spill]] %s2799_s27  ;;  %s39_s12 = sadd.s32 1, %s2635_s19 }
  0x34   : > { %s36_s15 = ssub.s32 %s2639_s20, %s2799_s27  ;;  %p46_p13 = scmp.ne.s32.totalorder %s2635_s19, %s2631_s18 }
  0x35   : > { %p37_p0 = scmp.eq.s32.totalorder %s36_s15, 0  ;;  %p47_p5 = scmp.eq.s32.totalorder %s2639_s20, 0 }
  0x36   : > { %p2809_p10 = por %p296_p2, %p46_p13  ;;  %p2261_p3 = scmp.lt.s32.totalorder %s2639_s20, 2 }
  0x37   : > { %s2815_s22 = scalar_select %p37_p0, %s2635_s19, %s39_s12  }
  0x38   : > { %2239 = dma.hbm_to_vmem [thread:$0]  (!%p2770_p11), %s3284_s5, 256, %s348_s30, [#allocation12], %s3252_s13, %s3252_s13, %s3254_s14  }
  0x39   : > { %s3286_s16 = scalar_select %p2809_p10, 1, 0 }
  0x3a   : > { %3288 = sst [smem:[#allocation25_spill]] %s2815_s22  ;;  %p48_p7 = por %p47_p5, %p46_p13 }
  0x3b   : > { %3287 = sst [smem:[#allocation24_spill]] %s3286_s16  ;;  %s3256_s26 = sand.u32 1, %s2635_s19  }
  0x3c   : > { %s2820_s30 = sshll.u32 %s3256_s26, 3  ;;  %s2823_s29 = sshll.u32 %s2639_s20, 7 }
  0x3d   : > { %p2825_p9 = pnand %p2261_p3, %p48_p7  ;;  %s407_s13 = sand.u32 1, %s2639_s20  }
  0x3e   : > { %s3290_s1 = sld [smem:[#allocation26_spill]]  ;;  %s411_s26 = scalar_lea.vmem [#allocation5], %s2820_s30 }
  0x3f   : > { %s418_s5 = sshll.u32 %s411_s26, 4  ;;  %s2645_s22 = smov [#allocation10]   ;;  %s2837_s5 = int_to_ptr.vmem [resolvable:$true] %s418_s5 }
  0x40   : > { %s2839_s27 = sshll.u32 %s2645_s22, 4  ;;  %s2841_s24 = scalar_lea.sflag [#allocation6], %s407_s13  ;;  %s335_s27 = int_to_ptr.vmem [resolvable:$true] %s2839_s27 }
  0x41   : > { %p2847_p13 = pneg %p2825_p9 }
  0x44   : > { %s2834_s12 = scalar_lea.hbm %s3290_s1, %s2823_s29  ;;  %s2432_s26 = scalar_lea.hbm %s3290_s1, 256 }
  0x45   : > { %s2427_s17 = scalar_lea.hbm %s2834_s12, 128  ;;  %p2433_p3 = scmp.lt.s32.totalorder %s2834_s12, %s3290_s1 }
  0x46   : > { %p2428_p2 = scmp.ne.s32.totalorder %s2834_s12, %s2427_s17  ;;  %p2434_p7 = scmp.lt.s32.totalorder %s2432_s26, %s2427_s17 }
  0x48   : > { %p2430_p0 = pnand %p2847_p13, %p2428_p2  ;;  %p2435_p1 = por %p2434_p7, %p2433_p3 }
  0x4a   : > { %p2431_p5 = pneg %p2430_p0 }
  0x4c   : > { %p2436_p12 = pnand %p2435_p1, %p2431_p5 }
  0x4e   : > { %2439 = shalt.err (!%p2436_p12)
}
  0x4f   : > { %s2440_s13 = scalar_lea.vmem %s2837_s5, 128  ;;  %s2646_s16 = smov [#allocation5]  }
  0x50   : > { %p2441_p6 = scmp.ne.s32.totalorder %s2837_s5, %s2440_s13  ;;  %s2445_s3 = sshll.u32 %s2646_s16, 4  ;;  %s2446_s3 = int_to_ptr.vmem [resolvable:$false] %s2445_s3 }
  0x51   : > { %s2447_s14 = scalar_lea.vmem %s2446_s3, 256  ;;  %p2448_p10 = scmp.lt.s32.totalorder %s2837_s5, %s2446_s3 }
  0x52   : > { %p2443_p2 = pnand %p2441_p6, %p2847_p13  ;;  %p2449_p4 = scmp.lt.s32.totalorder %s2447_s14, %s2440_s13 }
  0x54   : > { %p2444_p0 = pneg %p2443_p2  ;;  %p2450_p8 = por %p2449_p4, %p2448_p10 }
  0x56   : > { %p2451_p11 = pnand %p2450_p8, %p2444_p0 }
  0x58   : > { %2454 = shalt.err (!%p2451_p11)
}
  0x59   : > { %s3292_s11 = smov 4   ;;  %s3293_s17 = smov 64  }
  0x5a   : > { %2249 = dma.hbm_to_vmem [thread:$0]  (!%p2825_p9), %s2834_s12, 128, %s2837_s5, %s2841_s24, %s3293_s17, %s3293_s17, %s3292_s11  }
  0x5b   : > { %s2466_s16 = scalar_lea.vmem %s335_s27, 256  ;;  %p3294_p6 = scmp.ne.s32.totalorder %s3282_s28, 0 }
  0x5c   : > { %p2467_p1 = scmp.ne.s32.totalorder %s335_s27, %s2466_s16  ;;  %p2474_p8 = scmp.lt.s32.totalorder %s335_s27, %s335_s27 }
  0x5d   : > { %p3295_p12 = pneg %p3294_p6  ;;  %p2475_p11 = scmp.lt.s32.totalorder %s2466_s16, %s2466_s16 }
  0x5f   : > { %p2469_p5 = pnand %p2467_p1, %p3295_p12  ;;  %p2476_p10 = por %p2475_p11, %p2474_p8 }
  0x61   : > { %p2470_p4 = pneg %p2469_p5 }
  0x63   : > { %p2477_p3 = pnand %p2476_p10, %p2470_p4 }
  0x65   : > { %2480 = shalt.err (!%p2477_p3)
}
  0x66   : > { %2236 = dma.hbm_to_vmem [thread:$0]  (!%p3294_p6), %s3244_s4, 256, %s335_s27, [#allocation9], %s3293_s17, %s3293_s17, %s3292_s11  }
  0x67   : > { %s2647_s5 = smov [#allocation13]   ;;  %p3296_p2 = pmov %p3295_p12 }
  0x68   : > { %s360_s12 = sshll.u32 %s2647_s5, 4  ;;  %s361_s12 = int_to_ptr.vmem [resolvable:$true] %s360_s12 }
  0x69   : > { %s2492_s13 = scalar_lea.vmem %s361_s12, 512  ;;  %p2500_p12 = scmp.lt.s32.totalorder %s361_s12, %s361_s12 }
  0x6a   : > { %p2493_p7 = scmp.ne.s32.totalorder %s361_s12, %s2492_s13  ;;  %p2501_p5 = scmp.lt.s32.totalorder %s2492_s13, %s2492_s13 }
  0x6c   : > { %p2495_p0 = pnand %p2493_p7, %p3296_p2  ;;  %p2502_p4 = por %p2501_p5, %p2500_p12 }
  0x6e   : > { %p2496_p1 = pneg %p2495_p0 }
  0x70   : > { %p2503_p8 = pnand %p2502_p4, %p2496_p1 }
  0x72   : > { %2506 = shalt.err (!%p2503_p8)
}
  0x73   : > { %2242 = dma.hbm_to_vmem [thread:$0]  (!%p3294_p6), %s3246_s6, 512, %s361_s12, [#allocation12], %s3293_s17, %s3293_s17, %s3292_s11  }
  0x74   : > { %s2900_s26 = scalar_lea.hbm %s3240_s0, %s2823_s29  ;;  %s390_s28 = scalar_lea.vmem [#allocation2], %s2820_s30 }
  0x75   : > { %s397_s22 = sshll.u32 %s390_s28, 4  ;;  %s3297_s5 = sand.u32 1, %s2635_s19   ;;  %s2903_s22 = int_to_ptr.vmem [resolvable:$true] %s397_s22 }
  0x76   : > { %s387_s13 = scalar_lea.sflag [#allocation3], %s3297_s5  ;;  %s2507_s27 = scalar_lea.hbm %s2900_s26, 128 }
  0x77   : > { %p2508_p11 = scmp.ne.s32.totalorder %s2900_s26, %s2507_s27  ;;  %s2512_s14 = scalar_lea.hbm %s3240_s0, 256 }
  0x78   : > { %p2513_p6 = scmp.lt.s32.totalorder %s2900_s26, %s3240_s0  ;;  %p2514_p7 = scmp.lt.s32.totalorder %s2512_s14, %s2507_s27 }
  0x79   : > { %p2510_p10 = pnand %p2508_p11, %p2847_p13 }
  0x7a   : > { %p2515_p2 = por %p2514_p7, %p2513_p6 }
  0x7b   : > { %p2511_p3 = pneg %p2510_p10 }
  0x7d   : > { %p2516_p0 = pnand %p2515_p2, %p2511_p3 }
  0x7f   : > { %2519 = shalt.err (!%p2516_p0)
}
  0x80   : > { %s2520_s28 = scalar_lea.vmem %s2903_s22, 128  ;;  %s2648_s5 = smov [#allocation2]  }
  0x81   : > { %p2521_p1 = scmp.ne.s32.totalorder %s2903_s22, %s2520_s28  ;;  %s2525_s12 = sshll.u32 %s2648_s5, 4  ;;  %s2526_s12 = int_to_ptr.vmem [resolvable:$false] %s2525_s12 }
  0x82   : > { %s2527_s3 = scalar_lea.vmem %s2526_s12, 256  ;;  %p2528_p4 = scmp.lt.s32.totalorder %s2903_s22, %s2526_s12 }
  0x83   : > { %p2523_p12 = pnand %p2521_p1, %p2847_p13  ;;  %p2529_p8 = scmp.lt.s32.totalorder %s2527_s3, %s2520_s28 }
  0x85   : > { %p2524_p5 = pneg %p2523_p12  ;;  %p2530_p11 = por %p2529_p8, %p2528_p4 }
  0x87   : > { %p2531_p10 = pnand %p2530_p11, %p2524_p5 }
  0x89   : > { %2534 = shalt.err (!%p2531_p10)
}
  0x8a   : > { %2246 = dma.hbm_to_vmem [thread:$0]  (!%p2825_p9), %s2900_s26, 128, %s2903_s22, %s387_s13, %s3293_s17, %s3293_s17, %s3292_s11  }
  0x8b   : > { %s2934_s14 = scalar_lea.hbm %s3242_s2, %s2823_s29  ;;  %s432_s16 = scalar_lea.vmem [#allocation7], %s2820_s30 }
  0x8c   : > { %s439_s28 = sshll.u32 %s432_s16, 4  ;;  %s2535_s5 = scalar_lea.hbm %s2934_s14, 128  ;;  %s440_s28 = int_to_ptr.vmem [resolvable:$true] %s439_s28 }
  0x8d   : > { %p2536_p3 = scmp.ne.s32.totalorder %s2934_s14, %s2535_s5  ;;  %s2540_s26 = scalar_lea.hbm %s3242_s2, 256 }
  0x8e   : > { %p2541_p2 = scmp.lt.s32.totalorder %s2934_s14, %s3242_s2  ;;  %p2542_p0 = scmp.lt.s32.totalorder %s2540_s26, %s2535_s5 }
  0x8f   : > { %p2538_p6 = pnand %p2536_p3, %p2847_p13 }
  0x90   : > { %p2543_p1 = por %p2542_p0, %p2541_p2 }
  0x91   : > { %p2539_p7 = pneg %p2538_p6 }
  0x93   : > { %p2544_p12 = pnand %p2543_p1, %p2539_p7 }
  0x95   : > { %2547 = shalt.err (!%p2544_p12)
}
  0x96   : > { %s2548_s30 = scalar_lea.vmem %s440_s28, 128  ;;  %s2649_s29 = smov [#allocation7]  }
  0x97   : > { %p2549_p5 = scmp.ne.s32.totalorder %s440_s28, %s2548_s30  ;;  %s2553_s1 = sshll.u32 %s2649_s29, 4  ;;  %s2554_s1 = int_to_ptr.vmem [resolvable:$false] %s2553_s1 }
  0x98   : > { %s2555_s27 = scalar_lea.vmem %s2554_s1, 256  ;;  %p2556_p11 = scmp.lt.s32.totalorder %s440_s28, %s2554_s1 }
  0x99   : > { %p2551_p4 = pnand %p2549_p5, %p2847_p13  ;;  %p2557_p10 = scmp.lt.s32.totalorder %s2555_s27, %s2548_s30 }
  0x9b   : > { %p2552_p8 = pneg %p2551_p4  ;;  %p2558_p3 = por %p2557_p10, %p2556_p11 }
  0x9d   : > { %p2559_p6 = pnand %p2558_p3, %p2552_p8 }
  0x9f   : > { %2562 = shalt.err (!%p2559_p6)
}
  0xa0   : > { %2252 = dma.hbm_to_vmem [thread:$0]  (!%p2825_p9), %s2934_s14, 128, %s440_s28, %s2841_s24, %s3293_s17, %s3293_s17, %s3292_s11  }
  0xa1   : > { %p3298_p13 = scmp.ne.s32.totalorder %s3281_s25, 0 }
  0xa2   : > { %s2960_s20 = sand.u32 (!%p3298_p13), 1, %s2631_s18   ;;  %p3299_p7 = scmp.ne.s32.totalorder (!%p3298_p13), %s3278_s23, 0 }
  0xa3   : > { %451 = sbr.rel (%p3298_p13) target bundleno = 2978 (0xba2), region = 64  ;;  %s2963_s16 = sshll.u32 (!%p3298_p13), %s2960_s20, 3 }
  0xa4   : > { %s454_s5 = scalar_lea.sflag (!%p3298_p13), [#allocation3], %s2960_s20  ;;  %s457_s15 = scalar_lea.vmem (!%p3298_p13), [#allocation2], %s2963_s16 }
  0xa8   : > { %2606 = dma.done.wait (%p3299_p7), %s454_s5, 128  }
  0xa9   : > { %2608 = vsyncadd (%p3299_p7), %s454_s5, 4294967168  ;;  %s462_s24 = sand.u32 1, %s2742_s21   ;;  %s466_s11 = scalar_lea.vmem [#allocation5], %s2963_s16 }
  0xaa   : > { %s463_s25 = scalar_lea.sflag [#allocation6], %s462_s24 }
  0xab   : > { %2610 = dma.done.wait (%p3299_p7), %s463_s25, 256  }
  0xac   : > { %2612 = vsyncadd (%p3299_p7), %s463_s25, 4294967040  ;;  %s475_s17 = scalar_lea.vmem [#allocation7], %s2963_s16  ;;  %p3300_p9 = scmp.eq.s32.totalorder %s2742_s21, 0 }
  0xae   : > { %2614 = dma.done.wait (%p3300_p9), [#allocation9], 512   ;;  %p3301_p2 = pmov %p3300_p9 }
  0xb0   : > { %2616 = vsyncadd (%p3301_p2), [#allocation9], 4294966784  ;;  %p3302_p0 = pmov %p3301_p2 }
  0xb2   : > { %2618 = dma.done.wait (%p3302_p0), [#allocation12], 768   ;;  %p3303_p1 = pmov %p3302_p0 }
  0xb3   : > { %v2650_v0 = vmov 0.0   ;;  %vm2651_vm0 = vmmov 0   ;;  %v2330_v1 = vld [vmem:[#allocation10 + $0x8] sm:$0xff]   ;;  %v2331_v2 = vld [vmem:[#allocation8 + $0x8] sm:$0xff]   ;;  %v2332_v3 = vld [vmem:[#allocation10] sm:$0xff]   ;;  %vm579_vm1 = vcmask 261120  }
  0xb4   : > { %2620 = vsyncadd (%p3303_p1), [#allocation12], 4294966528  ;;  %2082 = vmatprep.subr.bf16.mxu1 %v2650_v0  ;;  %2074 = vmatprep.subr.bf16.mxu0 %v2650_v0  ;;  %v2333_v4 = vld [vmem:[#allocation8] sm:$0xff]   ;;  %v2335_v6 = vld [vmem:[%s457_s15] sm:$0xff]   ;;  %vm788_vm2 = vcmask 130048   ;;  %s2652_s3 = smov 112  }
  0xb5   : > { %2086 = vmatprep.mubr.msk.bf16.mxu1 %vm2651_vm0, %v2650_v0  ;;  %2078 = vmatprep.mubr.msk.bf16.mxu0 %vm2651_vm0, %v2650_v0  ;;  %v2334_v5 = vld [vmem:[%s466_s11] sm:$0xff]   ;;  %v2338_v9 = vld [vmem:[%s475_s17] sm:$0xff]   ;;  %vm909_vm3 = vcmask 1043456   ;;  %vm881_vm4 = vcmask 64512   ;;  %s2653_s13 = smov 96   ;;  %s2654_s30 = smov 80  }
  0xb6   : > { %2083 = vmatpush3.bf16.msra.mxu1 %v2330_v1  ;;  %2075 = vmatpush3.bf16.msra.mxu0 %v2331_v2  ;;  %v2336_v7 = vld [vmem:[#allocation11 + $0x8] sm:$0xff]   ;;  %v2337_v8 = vld [vmem:[#allocation11] sm:$0xff]   ;;  %v1975_v10 = vld [vmem:[%s3248_s8] ss:$0 sm:$0xff]  ;;  %s2655_s29 = smov 16   ;;  %s2656_s1 = smov 32  }
  0xb7   : > { %2084 = vmatprep.subr.bf16.mxu1 %v2650_v0  ;;  %2076 = vmatprep.subr.bf16.mxu0 %v2650_v0  ;;  %v1970_v11 = vld [vmem:[%s3247_s7] ss:$0 sm:$0xff]  ;;  %s2657_s27 = smov 48   ;;  %vm1687_vm5 = vcmask 392192   ;;  %vm1730_vm6 = vcmask 523264   ;;  %s1969_s16 = sshll.u32 %s2960_s20, 4 }
  0xb8   : > { %v1980_v32 = vld [vmem:[%s3249_s9] ss:$0 sm:$0xff]  ;;  %s3304_s24 = sld [smem:[#allocation24_spill]]  ;;  %s539_s25 = scalar_lea.vmem [#allocation14], %s1969_s16 }
  0xb9   : > { %s1791_s11 = sshll.u32 %s539_s25, 4  ;;  %s2027_s17 = sshll.u32 %s2742_s21, 8  ;;  %s3192_s11 = int_to_ptr.vmem [resolvable:$true] %s1791_s11 }
  0xba   : > { %2085 = vmatpush3.bf16.msra.mxu1 %v2332_v3  ;;  %2077 = vmatpush3.bf16.msra.mxu0 %v2333_v4  ;;  %s3305_s28 = sld [smem:[#allocation29_spill]]  ;;  %s2563_s26 = scalar_lea.vmem %s3192_s11, 256 }
  0xbb   : > { %2098 = vmatprep.subr.bf16.mxu1 %v2650_v0  ;;  %2090 = vmatprep.subr.bf16.mxu0 %v2650_v0  ;;  %p2564_p12 = scmp.ne.s32.totalorder %s3192_s11, %s2563_s26  ;;  %s2658_s21 = smov [#allocation14]  }
  0xbc   : > { %s2567_s22 = sshll.u32 %s2658_s21, 4  ;;  %s2568_s22 = int_to_ptr.vmem [resolvable:$false] %s2567_s22 }
  0xbd   : > { %2087 = vmatmul.mubr.msk.bf16.vlgmr.msra.gmra.mxu1 %vm579_vm1, %v2334_v5  ;;  %2079 = vmatmul.mubr.msk.bf16.vlgmr.msra.gmra.mxu0 %vm579_vm1, %v2335_v6  ;;  %p2570_p11 = scmp.lt.s32.totalorder %s3192_s11, %s2568_s22 }
  0xbe   : > { %2100 = vmatprep.mubr.msk.bf16.mxu1 %vm2651_vm0, %v2650_v0  ;;  %2091 = vmatpush3.bf16.msra.mxu0 %v2336_v7  ;;  %p3306_p5 = scmp.ne.s32.totalorder %s3304_s24, 0 }
  0xbf   : > { %2094 = vmatprep.mubr.msk.bf16.mxu0 %vm2651_vm0, %v2650_v0  ;;  %2092 = vmatprep.subr.bf16.mxu0 %v2650_v0 }
  0xc0   : > { %s3197_s12 = scalar_lea.hbm %s3305_s28, %s2027_s17  ;;  %p2565_p4 = pnand %p2564_p12, %p3306_p5 }
  0xc2   : > { %2093 = vmatpush3.bf16.msra.mxu0 %v2337_v8  ;;  %p2566_p8 = pneg %p2565_p4 }
  0xc3   : > { %2104 = vmatprep.subr.bf16.mxu0 %v2650_v0 }
  0xc5   : > { %2095 = vmatmul.mubr.msk.bf16.vlgmr.msra.gmra.mxu0 %vm579_vm1, %v2338_v9 }
  0xc6   : > { %2106 = vmatprep.mubr.msk.bf16.mxu0 %vm2651_vm0, %v2650_v0 }
 0x17d   : > { %v689_v12 = vpop.f32.mrf.mxu1  ;;  %v617_v14 = vpop.f32.mrf.mxu0 }
 0x17e   : > { %v690_v13 = vadd.f32 %v1975_v10, %v689_v12  ;;  %v618_v15 = vadd.f32 %v1970_v11, %v617_v14 }
 0x17f   : > { %v2088_v16 = vpop.f32.mrf.mxu1  ;;  %v2080_v18 = vpop.f32.mrf.mxu0 }
 0x180   : > { %v3015_v17 = vpack.c.bf16 %v690_v13, %v690_v13  ;;  %v768_v20 = vmul.f32 0.25, %v618_v15 }
 0x181   : > { %v692_v19 = vpop.f32.mrf.mxu1  ;;  %v620_v22 = vpop.f32.mrf.mxu0 }
 0x182   : > { %v693_v21 = vadd.f32 %v1975_v10, %v692_v19  ;;  %v793_v23 = vsel %vm788_vm2, %v3015_v17, 0  ;;  %v621_v26 = vadd.f32 %v1970_v11, %v620_v22  ;;  %v3022_v28 = vpack.c.bf16 %v768_v20, %v768_v20 }
 0x183   : > { %v2089_v24 = vpop.f32.mrf.mxu1  ;;  %2099 = vmatpush3.bf16.xpose.msra.mxu1 %v793_v23  ;;  %v2081_v27 = vpop.f32.mrf.mxu0 }
 0x184   : > { %v3019_v25 = vpack.c.bf16 %v693_v21, %v693_v21  ;;  %2110 = vmatprep.subr.bf16.mxu1 %v2650_v0  ;;  %v769_v30 = vmul.f32 0.25, %v621_v26 }
 0x185   : > { %v761_v33 = vpop.f32.mrf.mxu0 }
 0x186   : > { %1051 = vrot.lane.b32.xlu1 %v3019_v25, %s2652_s3  ;;  %v839_v29 = vsel %vm788_vm2, %v3019_v25, 0  ;;  %v3033_v31 = vpack.c.bf16 %v769_v30, %v769_v30  ;;  %v762_v35 = vadd.f32 %v1980_v32, %v761_v33 }
 0x187   : > { %2105 = vmatpush3.bf16.xpose.msra.mxu0 %v839_v29  ;;  %v2096_v34 = vpop.f32.mrf.mxu0 }
 0x188   : > { %2116 = vmatprep.subr.bf16.mxu0 %v2650_v0  ;;  %v3042_v39 = vpack.c.bf16 %v762_v35, %v762_v35 }
 0x189   : > { %v764_v36 = vpop.f32.mrf.mxu0 }
 0x18a   : > { %2101 = vmatmul.mubr.msk.bf16.vlgmr.msra.gmra.mxu1 %vm788_vm2, %v3022_v28  ;;  %v765_v37 = vadd.f32 %v1980_v32, %v764_v36  ;;  %v911_v41 = vsel %vm909_vm3, %v3042_v39, 0 }
 0x18b   : > { %2112 = vmatprep.mubr.msk.bf16.mxu1 %vm2651_vm0, %v2650_v0  ;;  %v2097_v38 = vpop.f32.mrf.mxu0  ;;  %2111 = vmatpush3.bf16.msra.mxu1 %v911_v41 }
 0x18c   : > { %v3044_v40 = vpack.c.bf16 %v765_v37, %v765_v37  ;;  %2122 = vmatprep.subr.bf16.mxu1 %v2650_v0 }
 0x18e   : > { %2107 = vmatmul.mubr.msk.bf16.vlgmr.msra.gmra.mxu0 %vm788_vm2, %v3033_v31  ;;  %v957_v42 = vsel %vm909_vm3, %v3044_v40, 0 }
 0x18f   : > { %2118 = vmatprep.mubr.msk.bf16.mxu0 %vm2651_vm0, %v2650_v0  ;;  %2117 = vmatpush3.bf16.msra.mxu0 %v957_v42 }
 0x190   : > { %2128 = vmatprep.subr.bf16.mxu0 %v2650_v0 }
 0x1f8   : > { %v1052_v63 = vpop.permute.xlu1 %1051 }
 0x1f9   : > { %v1057_v11 = vsel %vm788_vm2, %v1052_v63, 0 }
 0x24a   : > { %v829_v43 = vpop.f32.mrf.mxu1 }
 0x24b   : > { %v882_v44 = vsel %vm881_vm4, %v829_v43, -inf }
 0x24c   : > { %883 = vmax.xlane.f32.xlu0 %v882_v44  ;;  %v2102_v45 = vpop.f32.mrf.mxu1 }
 0x24e   : > { %v832_v46 = vpop.f32.mrf.mxu1  ;;  %v875_v47 = vpop.f32.mrf.mxu0 }
 0x24f   : > { %v885_v48 = vsel %vm881_vm4, %v875_v47, -inf }
 0x250   : > { %v2103_v49 = vpop.f32.mrf.mxu1  ;;  %886 = vmax.xlane.f32.xlu0 %v885_v48  ;;  %v2108_v50 = vpop.f32.mrf.mxu0 }
 0x252   : > { %v878_v51 = vpop.f32.mrf.mxu0 }
 0x254   : > { %v2109_v52 = vpop.f32.mrf.mxu0 }
 0x266   : > { %1001 = vrot.lane.b32.xlu0 %v3015_v17, %s2652_s3 }
 0x2d5   : > { %v884_v53 = vpop.xlane.xlu0 %883 }
 0x2d6   : > { %v888_v54 = vsub.f32 %v829_v43, %v884_v53 }
 0x2d8   : > { %v890_v55 = vmul.f32 1.442695, %v888_v54 }
 0x2d9   : > { %v887_v56 = vpop.xlane.xlu0 %886 }
 0x2da   : > { %2343 = vpow2.f32 %v890_v55  ;;  %v889_v57 = vsub.f32 %v875_v47, %v887_v56 }
 0x2dc   : > { %v892_v58 = vmul.f32 1.442695, %v889_v57 }
 0x2dd   : > { %v1002_v5 = vpop.permute.xlu0 %1001 }
 0x2de   : > { %2345 = vpow2.f32 %v892_v58  ;;  %v1007_v8 = vsel %vm788_vm2, %v1002_v5, 0 }
 0x2e7   : > { %v2344_v59 = vpop.eup %2343 }
 0x2e8   : > { %v894_v60 = vsel %vm881_vm4, %v2344_v59, 0.0 }
 0x2e9   : > { %895 = vadd.xlane.f32.xlu1 %v894_v60 }
 0x2eb   : > { %v2346_v61 = vpop.eup %2345 }
 0x2ec   : > { %v897_v62 = vsel %vm881_vm4, %v2346_v61, 0.0 }
 0x2ed   : > { %898 = vadd.xlane.f32.xlu1 %v897_v62 }
 0x2fe   : > { %999 = vrot.lane.b32.xlu1 %v3022_v28, %s2652_s3 }
 0x302   : > { %1049 = vrot.lane.b32.xlu1 %v3033_v31, %s2652_s3 }
 0x372   : > { %v896_v1 = vpop.xlane.xlu1 %895 }
 0x373   : > { %2347 = vrcp.f32 %v896_v1 }
 0x376   : > { %v899_v2 = vpop.xlane.xlu1 %898 }
 0x377   : > { %2349 = vrcp.f32 %v899_v2 }
 0x37a   : > { %v1000_v12 = vpop.permute.xlu1 %999 }
 0x37e   : > { %v1050_v13 = vpop.permute.xlu1 %1049 }
 0x380   : > { %v2348_v3 = vpop.eup %2347 }
 0x381   : > { %v902_v4 = vmul.f32 %v2348_v3, %v2344_v59 }
 0x383   : > { %v904_v6 = vpack.c.bf16 %v902_v4, %v902_v4 }
 0x384   : > { %v2350_v7 = vpop.eup %2349 }
 0x385   : > { %2113 = vmatmul.mubr.msk.bf16.vlgmr.msra.gmra.mxu1 %vm881_vm4, %v904_v6  ;;  %v903_v9 = vmul.f32 %v2350_v7, %v2346_v61 }
 0x386   : > { %2123 = vmatpush3.bf16.xpose.msra.mxu1 %v1007_v8  ;;  %2124 = vmatprep.mubr.msk.bf16.mxu1 %vm2651_vm0, %v2650_v0 }
 0x387   : > { %v905_v10 = vpack.c.bf16 %v903_v9, %v903_v9  ;;  %2134 = vmatprep.subr.bf16.mxu1 %v2650_v0 }
 0x389   : > { %2119 = vmatmul.mubr.msk.bf16.vlgmr.msra.gmra.mxu0 %vm881_vm4, %v905_v10 }
 0x38a   : > { %2129 = vmatpush3.bf16.xpose.msra.mxu0 %v1057_v11  ;;  %2130 = vmatprep.mubr.msk.bf16.mxu0 %vm2651_vm0, %v2650_v0 }
 0x38b   : > { %2140 = vmatprep.subr.bf16.mxu0 %v2650_v0 }
 0x38d   : > { %2125 = vmatmul.mubr.msk.bf16.vlgmr.msra.gmra.mxu1 %vm788_vm2, %v1000_v12 }
 0x38e   : > { %2136 = vmatprep.mubr.msk.bf16.mxu1 %vm2651_vm0, %v2650_v0 }
 0x391   : > { %2131 = vmatmul.mubr.msk.bf16.vlgmr.msra.gmra.mxu0 %vm788_vm2, %v1050_v13 }
 0x392   : > { %2142 = vmatprep.mubr.msk.bf16.mxu0 %vm2651_vm0, %v2650_v0 }
 0x445   : > { %v3078_v14 = vpop.f32.mrf.mxu1 }
 0x447   : > { %v2114_v15 = vpop.f32.mrf.mxu1 }
 0x449   : > { %v950_v16 = vpop.f32.mrf.mxu1  ;;  %v3080_v18 = vpop.f32.mrf.mxu0 }
 0x44b   : > { %v2115_v19 = vpop.f32.mrf.mxu1  ;;  %v2120_v20 = vpop.f32.mrf.mxu0 }
 0x44d   : > { %v996_v21 = vpop.f32.mrf.mxu0  ;;  %v1043_v22 = vpop.f32.mrf.mxu1 }
 0x44e   : > { %v1099_v23 = vsel %vm881_vm4, %v1043_v22, -inf }
 0x44f   : > { %1100 = vmax.xlane.f32.xlu0 %v1099_v23  ;;  %v2121_v24 = vpop.f32.mrf.mxu0  ;;  %v2126_v26 = vpop.f32.mrf.mxu1 }
 0x451   : > { %v1046_v27 = vpop.f32.mrf.mxu1  ;;  %v1093_v29 = vpop.f32.mrf.mxu0 }
 0x452   : > { %v1102_v30 = vsel %vm881_vm4, %v1093_v29, -inf }
 0x453   : > { %v2127_v32 = vpop.f32.mrf.mxu1  ;;  %1103 = vmax.xlane.f32.xlu1 %v1102_v30  ;;  %v2132_v33 = vpop.f32.mrf.mxu0 }
 0x455   : > { %v1096_v34 = vpop.f32.mrf.mxu0 }
 0x457   : > { %v2133_v35 = vpop.f32.mrf.mxu0 }
 0x464   : > { %1171 = vrot.lane.b32.xlu1 %v3044_v40, %s2652_s3 }
 0x468   : > { %1221 = vrot.lane.b32.xlu1 %v3015_v17, %s2653_s13 }
 0x46c   : > { %1271 = vrot.lane.b32.xlu1 %v3019_v25, %s2653_s13 }
 0x470   : > { %1269 = vrot.lane.b32.xlu1 %v3033_v31, %s2653_s13 }
 0x4d8   : > { %v1101_v36 = vpop.xlane.xlu0 %1100 }
 0x4d9   : > { %v1105_v37 = vsub.f32 %v1043_v22, %v1101_v36 }
 0x4db   : > { %v1107_v38 = vmul.f32 1.442695, %v1105_v37 }
 0x4dc   : > { %v1104_v41 = vpop.xlane.xlu1 %1103 }
 0x4dd   : > { %2351 = vpow2.f32 %v1107_v38  ;;  %v1106_v42 = vsub.f32 %v1093_v29, %v1104_v41 }
 0x4df   : > { %v1109_v43 = vmul.f32 1.442695, %v1106_v42 }
 0x4e0   : > { %v1172_v44 = vpop.permute.xlu1 %1171 }
 0x4e1   : > { %2353 = vpow2.f32 %v1109_v43  ;;  %v1177_v45 = vsel %vm909_vm3, %v1172_v44, 0 }
 0x4e2   : > { %2141 = vmatpush3.bf16.msra.mxu0 %v1177_v45 }
 0x4e3   : > { %2152 = vmatprep.subr.bf16.mxu0 %v2650_v0 }
 0x4e4   : > { %v1222_v55 = vpop.permute.xlu1 %1221 }
 0x4e5   : > { %v1227_v59 = vsel %vm788_vm2, %v1222_v55, 0 }
 0x4e8   : > { %v1272_v61 = vpop.permute.xlu1 %1271 }
 0x4e9   : > { %v1277_v63 = vsel %vm788_vm2, %v1272_v61, 0 }
 0x4ea   : > { %v2352_v46 = vpop.eup %2351 }
 0x4eb   : > { %v1111_v47 = vsel %vm881_vm4, %v2352_v46, 0.0 }
 0x4ec   : > { %1112 = vadd.xlane.f32.xlu0 %v1111_v47  ;;  %v1270_v2 = vpop.permute.xlu1 %1269 }
 0x4ee   : > { %v2354_v48 = vpop.eup %2353 }
 0x4ef   : > { %v1114_v49 = vsel %vm881_vm4, %v2354_v48, 0.0 }
 0x4f0   : > { %1115 = vadd.xlane.f32.xlu0 %v1114_v49 }
 0x506   : > { %1123 = vrot.lane.b32.xlu0 %v3042_v39, %s2652_s3  ;;  %s1778_s3 = scalar_lea.sflag [#allocation4], %s2960_s20 }
 0x50a   : > { %1219 = vrot.lane.b32.xlu0 %v3022_v28, %s2653_s13 }
 0x575   : > { %v1113_v50 = vpop.xlane.xlu0 %1112 }
 0x576   : > { %2355 = vrcp.f32 %v1113_v50 }
 0x579   : > { %v1116_v51 = vpop.xlane.xlu0 %1115 }
 0x57a   : > { %2357 = vrcp.f32 %v1116_v51 }
 0x57d   : > { %v1124_v52 = vpop.permute.xlu0 %1123 }
 0x57e   : > { %v1129_v53 = vsel %vm909_vm3, %v1124_v52, 0 }
 0x57f   : > { %2135 = vmatpush3.bf16.msra.mxu1 %v1129_v53 }
 0x580   : > { %2146 = vmatprep.subr.bf16.mxu1 %v2650_v0 }
 0x581   : > { %v1220_v1 = vpop.permute.xlu0 %1219 }
 0x583   : > { %v2356_v54 = vpop.eup %2355 }
 0x584   : > { %v1119_v56 = vmul.f32 %v2356_v54, %v2352_v46 }
 0x586   : > { %v1121_v57 = vpack.c.bf16 %v1119_v56, %v1119_v56 }
 0x587   : > { %v2358_v58 = vpop.eup %2357 }
 0x588   : > { %2137 = vmatmul.mubr.msk.bf16.vlgmr.msra.gmra.mxu1 %vm881_vm4, %v1121_v57  ;;  %v1120_v60 = vmul.f32 %v2358_v58, %v2354_v48 }
 0x589   : > { %2147 = vmatpush3.bf16.xpose.msra.mxu1 %v1227_v59  ;;  %2148 = vmatprep.mubr.msk.bf16.mxu1 %vm2651_vm0, %v2650_v0 }
 0x58a   : > { %v1122_v62 = vpack.c.bf16 %v1120_v60, %v1120_v60  ;;  %2158 = vmatprep.subr.bf16.mxu1 %v2650_v0 }
 0x58c   : > { %2143 = vmatmul.mubr.msk.bf16.vlgmr.msra.gmra.mxu0 %vm881_vm4, %v1122_v62 }
 0x58d   : > { %2153 = vmatpush3.bf16.xpose.msra.mxu0 %v1277_v63  ;;  %2154 = vmatprep.mubr.msk.bf16.mxu0 %vm2651_vm0, %v2650_v0 }
 0x58e   : > { %2164 = vmatprep.subr.bf16.mxu0 %v2650_v0 }
 0x590   : > { %2149 = vmatmul.mubr.msk.bf16.vlgmr.msra.gmra.mxu1 %vm788_vm2, %v1220_v1 }
 0x591   : > { %2160 = vmatprep.mubr.msk.bf16.mxu1 %vm2651_vm0, %v2650_v0 }
 0x594   : > { %2155 = vmatmul.mubr.msk.bf16.vlgmr.msra.gmra.mxu0 %vm788_vm2, %v1270_v2 }
 0x595   : > { %2166 = vmatprep.mubr.msk.bf16.mxu0 %vm2651_vm0, %v2650_v0 }
 0x648   : > { %v3118_v3 = vpop.f32.mrf.mxu1 }
 0x64a   : > { %v2138_v4 = vpop.f32.mrf.mxu1 }
 0x64c   : > { %v1168_v5 = vpop.f32.mrf.mxu1  ;;  %v3120_v6 = vpop.f32.mrf.mxu0 }
 0x64d   : > { %v2315_v7 = vpack.i.bf16 %v3120_v6, %v3118_v3 }
 0x64e   : > { %v2139_v8 = vpop.f32.mrf.mxu1  ;;  %v2144_v9 = vpop.f32.mrf.mxu0 }
 0x650   : > { %v1216_v10 = vpop.f32.mrf.mxu0  ;;  %v1263_v11 = vpop.f32.mrf.mxu1 }
 0x651   : > { %v1319_v12 = vsel %vm881_vm4, %v1263_v11, -inf }
 0x652   : > { %1320 = vmax.xlane.f32.xlu0 %v1319_v12  ;;  %v2145_v13 = vpop.f32.mrf.mxu0  ;;  %v2150_v15 = vpop.f32.mrf.mxu1 }
 0x654   : > { %v1266_v16 = vpop.f32.mrf.mxu1  ;;  %v1313_v19 = vpop.f32.mrf.mxu0 }
 0x655   : > { %v1322_v20 = vsel %vm881_vm4, %v1313_v19, -inf }
 0x656   : > { %v2151_v21 = vpop.f32.mrf.mxu1  ;;  %1323 = vmax.xlane.f32.xlu1 %v1322_v20  ;;  %v2156_v22 = vpop.f32.mrf.mxu0 }
 0x658   : > { %v1316_v23 = vpop.f32.mrf.mxu0 }
 0x65a   : > { %v2157_v24 = vpop.f32.mrf.mxu0 }
 0x667   : > { %1391 = vrot.lane.b32.xlu1 %v3044_v40, %s2653_s13 }
 0x66b   : > { %1441 = vrot.lane.b32.xlu1 %v3015_v17, %s2654_s30 }
 0x66f   : > { %1491 = vrot.lane.b32.xlu1 %v3019_v25, %s2654_s30 }
 0x673   : > { %1489 = vrot.lane.b32.xlu1 %v3033_v31, %s2654_s30 }
 0x6db   : > { %v1321_v26 = vpop.xlane.xlu0 %1320 }
 0x6dc   : > { %v1325_v27 = vsub.f32 %v1263_v11, %v1321_v26 }
 0x6de   : > { %v1327_v29 = vmul.f32 1.442695, %v1325_v27 }
 0x6df   : > { %v1324_v30 = vpop.xlane.xlu1 %1323 }
 0x6e0   : > { %2359 = vpow2.f32 %v1327_v29  ;;  %v1326_v32 = vsub.f32 %v1313_v19, %v1324_v30 }
 0x6e2   : > { %v1329_v33 = vmul.f32 1.442695, %v1326_v32 }
 0x6e3   : > { %v1392_v34 = vpop.permute.xlu1 %1391 }
 0x6e4   : > { %2361 = vpow2.f32 %v1329_v33  ;;  %v1397_v35 = vsel %vm909_vm3, %v1392_v34, 0 }
 0x6e5   : > { %2165 = vmatpush3.bf16.msra.mxu0 %v1397_v35 }
 0x6e6   : > { %2176 = vmatprep.subr.bf16.mxu0 %v2650_v0 }
 0x6e7   : > { %v1442_v44 = vpop.permute.xlu1 %1441 }
 0x6e8   : > { %v1447_v48 = vsel %vm788_vm2, %v1442_v44, 0 }
 0x6eb   : > { %v1492_v49 = vpop.permute.xlu1 %1491 }
 0x6ec   : > { %v1497_v51 = vsel %vm788_vm2, %v1492_v49, 0 }
 0x6ed   : > { %v2360_v17 = vpop.eup %2359 }
 0x6ee   : > { %v1331_v25 = vsel %vm881_vm4, %v2360_v17, 0.0 }
 0x6ef   : > { %1332 = vadd.xlane.f32.xlu0 %v1331_v25  ;;  %v1490_v53 = vpop.permute.xlu1 %1489  ;;  %v2340_v25 = vld [vmem:[#allocation13 + $0x10] sm:$0xff]  }
 0x6f1   : > { %v2362_v36 = vpop.eup %2361 }
 0x6f2   : > { %v1334_v31 = vsel %vm881_vm4, %v2362_v36, 0.0 }
 0x6f3   : > { %1335 = vadd.xlane.f32.xlu0 %v1334_v31  ;;  %v2342_v31 = vld [vmem:[#allocation13] sm:$0xff]  }
 0x709   : > { %1343 = vrot.lane.b32.xlu0 %v3042_v39, %s2653_s13  ;;  %s2569_s13 = scalar_lea.vmem %s2568_s22, 512 }
 0x70a   : > { %p2571_p10 = scmp.lt.s32.totalorder %s2569_s13, %s2563_s26 }
 0x70c   : > { %p2572_p3 = por %p2571_p10, %p2570_p11 }
 0x70d   : > { %1439 = vrot.lane.b32.xlu0 %v3022_v28, %s2654_s30 }
 0x70e   : > { %p2573_p6 = pnand %p2572_p3, %p2566_p8 }
 0x778   : > { %v1333_v37 = vpop.xlane.xlu0 %1332 }
 0x779   : > { %2363 = vrcp.f32 %v1333_v37 }
 0x77c   : > { %v1336_v38 = vpop.xlane.xlu0 %1335 }
 0x77d   : > { %2365 = vrcp.f32 %v1336_v38 }
 0x780   : > { %v1344_v41 = vpop.permute.xlu0 %1343 }
 0x781   : > { %v1349_v42 = vsel %vm909_vm3, %v1344_v41, 0 }
 0x782   : > { %2159 = vmatpush3.bf16.msra.mxu1 %v1349_v42 }
 0x783   : > { %2170 = vmatprep.subr.bf16.mxu1 %v2650_v0 }
 0x784   : > { %v1440_v52 = vpop.permute.xlu0 %1439 }
 0x786   : > { %v2364_v43 = vpop.eup %2363 }
 0x787   : > { %v1339_v45 = vmul.f32 %v2364_v43, %v2360_v17  ;;  %v2339_v17 = vld [vmem:[#allocation13 + $0x18] sm:$0xff]  }
 0x789   : > { %v1341_v46 = vpack.c.bf16 %v1339_v45, %v1339_v45 }
 0x78a   : > { %v2366_v47 = vpop.eup %2365 }
 0x78b   : > { %2161 = vmatmul.mubr.msk.bf16.vlgmr.msra.gmra.mxu1 %vm881_vm4, %v1341_v46  ;;  %v1340_v28 = vmul.f32 %v2366_v47, %v2362_v36  ;;  %v2341_v36 = vld [vmem:[#allocation13 + $0x8] sm:$0xff]  }
 0x78c   : > { %2171 = vmatpush3.bf16.xpose.msra.mxu1 %v1447_v48  ;;  %2172 = vmatprep.mubr.msk.bf16.mxu1 %vm2651_vm0, %v2650_v0 }
 0x78d   : > { %v1342_v50 = vpack.c.bf16 %v1340_v28, %v1340_v28  ;;  %2182 = vmatprep.subr.bf16.mxu1 %v2650_v0 }
 0x78f   : > { %2167 = vmatmul.mubr.msk.bf16.vlgmr.msra.gmra.mxu0 %vm881_vm4, %v1342_v50 }
 0x790   : > { %2177 = vmatpush3.bf16.xpose.msra.mxu0 %v1497_v51  ;;  %2178 = vmatprep.mubr.msk.bf16.mxu0 %vm2651_vm0, %v2650_v0 }
 0x791   : > { %2188 = vmatprep.subr.bf16.mxu0 %v2650_v0 }
 0x793   : > { %2173 = vmatmul.mubr.msk.bf16.vlgmr.msra.gmra.mxu1 %vm788_vm2, %v1440_v52 }
 0x794   : > { %2184 = vmatprep.mubr.msk.bf16.mxu1 %vm2651_vm0, %v2650_v0 }
 0x797   : > { %2179 = vmatmul.mubr.msk.bf16.vlgmr.msra.gmra.mxu0 %vm788_vm2, %v1490_v53 }
 0x798   : > { %2190 = vmatprep.mubr.msk.bf16.mxu0 %vm2651_vm0, %v2650_v0 }
 0x84b   : > { %v1385_v54 = vpop.f32.mrf.mxu1 }
 0x84d   : > { %v2162_v55 = vpop.f32.mrf.mxu1 }
 0x84f   : > { %v1388_v56 = vpop.f32.mrf.mxu1  ;;  %v1433_v57 = vpop.f32.mrf.mxu0 }
 0x850   : > { %v2320_v12 = vpack.i.bf16 %v1433_v57, %v1385_v54 }
 0x851   : > { %v2163_v58 = vpop.f32.mrf.mxu1  ;;  %v2168_v59 = vpop.f32.mrf.mxu0 }
 0x853   : > { %v1436_v60 = vpop.f32.mrf.mxu0  ;;  %v1483_v61 = vpop.f32.mrf.mxu1 }
 0x854   : > { %v1539_v62 = vsel %vm881_vm4, %v1483_v61, -inf }
 0x855   : > { %1540 = vmax.xlane.f32.xlu0 %v1539_v62  ;;  %v2169_v63 = vpop.f32.mrf.mxu0  ;;  %v2174_v1 = vpop.f32.mrf.mxu1 }
 0x857   : > { %v1486_v2 = vpop.f32.mrf.mxu1  ;;  %v1533_v4 = vpop.f32.mrf.mxu0 }
 0x858   : > { %v1542_v5 = vsel %vm881_vm4, %v1533_v4, -inf }
 0x859   : > { %v2175_v8 = vpop.f32.mrf.mxu1  ;;  %1543 = vmax.xlane.f32.xlu1 %v1542_v5  ;;  %v2180_v9 = vpop.f32.mrf.mxu0 }
 0x85b   : > { %v1536_v10 = vpop.f32.mrf.mxu0 }
 0x85d   : > { %v2181_v11 = vpop.f32.mrf.mxu0 }
 0x86a   : > { %1611 = vrot.lane.b32.xlu1 %v3044_v40, %s2654_s30 }
 0x86e   : > { %2316 = vrot.lane.b32.xlu1 %v2315_v7, %s2655_s29 }
 0x872   : > { %2321 = vrot.lane.b32.xlu1 %v2320_v12, %s2656_s1 }
 0x8de   : > { %v1541_v13 = vpop.xlane.xlu0 %1540 }
 0x8df   : > { %v1545_v15 = vsub.f32 %v1483_v61, %v1541_v13 }
 0x8e1   : > { %v1547_v16 = vmul.f32 1.442695, %v1545_v15 }
 0x8e2   : > { %v1544_v19 = vpop.xlane.xlu1 %1543 }
 0x8e3   : > { %2367 = vpow2.f32 %v1547_v16  ;;  %v1546_v20 = vsub.f32 %v1533_v4, %v1544_v19 }
 0x8e5   : > { %v1549_v21 = vmul.f32 1.442695, %v1546_v20 }
 0x8e6   : > { %v1612_v22 = vpop.permute.xlu1 %1611 }
 0x8e7   : > { %2369 = vpow2.f32 %v1549_v21  ;;  %v1617_v23 = vsel %vm909_vm3, %v1612_v22, 0 }
 0x8e8   : > { %2189 = vmatpush3.bf16.msra.mxu0 %v1617_v23 }
 0x8ea   : > { %v2317_v48 = vpop.permute.xlu1 %2316 }
 0x8eb   : > { %v2319_v49 = vunpack.i.h.bf16 %v2317_v48  ;;  %v2318_v50 = vunpack.i.l.bf16 %v2317_v48 }
 0x8ed   : > { %v1684_v53 = vsel %vm788_vm2, %v3080_v18, %v2319_v49  ;;  %v1683_v54 = vsel %vm788_vm2, %v3078_v14, %v2318_v50  ;;  %v2007_v18 = vld [vmem:[%s3250_s10] ss:$0 sm:$0xff] }
 0x8ee   : > { %v2322_v28 = vpop.permute.xlu1 %2321 }
 0x8ef   : > { %v2324_v51 = vunpack.i.h.bf16 %v2322_v28 }
 0x8f0   : > { %v2368_v40 = vpop.eup %2367 }
 0x8f1   : > { %v1551_v24 = vsel %vm881_vm4, %v2368_v40, 0.0  ;;  %v1686_v58 = vsel %vm579_vm1, %v1684_v53, %v2324_v51 }
 0x8f2   : > { %1552 = vadd.xlane.f32.xlu0 %v1551_v24 }
 0x8f4   : > { %v2370_v3 = vpop.eup %2369 }
 0x8f5   : > { %v1554_v6 = vsel %vm881_vm4, %v2370_v3, 0.0 }
 0x8f6   : > { %1555 = vadd.xlane.f32.xlu0 %v1554_v6 }
 0x90c   : > { %1563 = vrot.lane.b32.xlu0 %v3042_v39, %s2654_s30 }
 0x97b   : > { %v1553_v7 = vpop.xlane.xlu0 %1552 }
 0x97c   : > { %2371 = vrcp.f32 %v1553_v7 }
 0x97f   : > { %v1556_v26 = vpop.xlane.xlu0 %1555 }
 0x980   : > { %2373 = vrcp.f32 %v1556_v26 }
 0x983   : > { %v1564_v27 = vpop.permute.xlu0 %1563 }
 0x984   : > { %v1569_v29 = vsel %vm909_vm3, %v1564_v27, 0 }
 0x985   : > { %2183 = vmatpush3.bf16.msra.mxu1 %v1569_v29 }
 0x986   : > { %2194 = vmatprep.subr.bf16.mxu1 %v2650_v0 }
 0x989   : > { %v2372_v30 = vpop.eup %2371 }
 0x98a   : > { %v1559_v32 = vmul.f32 %v2372_v30, %v2368_v40 }
 0x98c   : > { %v1561_v33 = vpack.c.bf16 %v1559_v32, %v1559_v32 }
 0x98d   : > { %v2374_v34 = vpop.eup %2373 }
 0x98e   : > { %2185 = vmatmul.mubr.msk.bf16.vlgmr.msra.gmra.mxu1 %vm881_vm4, %v1561_v33  ;;  %v1560_v35 = vmul.f32 %v2374_v34, %v2370_v3 }
 0x98f   : > { %2202 = vmatprep.mubr.msk.bf16.mxu1 %vm2651_vm0, %v2650_v0  ;;  %2195 = vmatpush3.bf16.msra.mxu1 %v2339_v17 }
 0x990   : > { %v1562_v39 = vpack.c.bf16 %v1560_v35, %v1560_v35  ;;  %2196 = vmatprep.subr.bf16.mxu1 %v2650_v0 }
 0x992   : > { %2191 = vmatmul.mubr.msk.bf16.vlgmr.msra.gmra.mxu0 %vm881_vm4, %v1562_v39 }
 0x993   : > { %2197 = vmatpush3.bf16.msra.mxu1 %v2340_v25 }
 0x994   : > { %2198 = vmatprep.subr.bf16.mxu1 %v2650_v0 }
 0x997   : > { %2199 = vmatpush3.bf16.msra.mxu1 %v2341_v36 }
 0x998   : > { %2200 = vmatprep.subr.bf16.mxu1 %v2650_v0  ;;  %v2323_v0 = vunpack.i.l.bf16 %v2322_v28 }
 0x99a   : > { %v1685_v57 = vsel %vm579_vm1, %v1683_v54, %v2323_v0 }
 0x99b   : > { %2201 = vmatpush3.bf16.msra.mxu1 %v2342_v31 }
 0xa4e   : > { %v1605_v37 = vpop.f32.mrf.mxu1 }
 0xa50   : > { %v2186_v38 = vpop.f32.mrf.mxu1 }
 0xa52   : > { %v1608_v41 = vpop.f32.mrf.mxu1  ;;  %v1653_v42 = vpop.f32.mrf.mxu0 }
 0xa53   : > { %v2325_v43 = vpack.i.bf16 %v1653_v42, %v1605_v37 }
 0xa54   : > { %v2187_v44 = vpop.f32.mrf.mxu1  ;;  %v2192_v45 = vpop.f32.mrf.mxu0 }
 0xa55   : > { %2326 = vrot.lane.b32.xlu0 %v2325_v43, %s2657_s27 }
 0xa56   : > { %v1656_v46 = vpop.f32.mrf.mxu0 }
 0xa58   : > { %v2193_v47 = vpop.f32.mrf.mxu0 }
 0xac7   : > { %v2327_v52 = vpop.permute.xlu0 %2326 }
 0xac8   : > { %v2329_v55 = vunpack.i.h.bf16 %v2327_v52  ;;  %v2328_v56 = vunpack.i.l.bf16 %v2327_v52 }
 0xaca   : > { %v1689_v59 = vsel %vm1687_vm5, %v1686_v58, %v2329_v55  ;;  %v1688_v60 = vsel %vm1687_vm5, %v1685_v57, %v2328_v56 }
 0xacb   : > { %v1690_v61 = vpack.c.bf16 %v1689_v59, %v1688_v60 }
 0xacd   : > { %2203 = vmatmul.mubr.msk.bf16.vlgmr.msra.gmra.mxu1 %vm1730_vm6, %v1690_v61 }
 0xb8d   : > { %v1768_v62 = vpop.f32.mrf.mxu1 }
 0xb8e   : > { %v1769_v14 = vadd.f32 %v2007_v18, %v1768_v62 }
 0xb8f   : > { %v2204_v63 = vpop.f32.mrf.mxu1 }
 0xb90   : > { %1775 = vst [vmem:[%s539_s25] sm:$0xff] %v1769_v14 }
 0xb91   : > { %v1771_v1 = vpop.f32.mrf.mxu1 }
 0xb92   : > { %v1772_v2 = vadd.f32 %v2007_v18, %v1771_v1 }
 0xb93   : > { %v2205_v4 = vpop.f32.mrf.mxu1 }
 0xb94   : > { %1776 = vst [vmem:[%s539_s25 + $0x8] sm:$0xff] %v1772_v2 }
 0xb95   : > { %2576 = shalt.err (!%p2573_p6)
}
 0xb96   : > { %s2577_s30 = scalar_lea.hbm %s3197_s12, 256  ;;  %s2581_s27 = scalar_lea.hbm %s3305_s28, 512 }
 0xb97   : > { %p2578_p13 = scmp.ne.s32.totalorder %s3197_s12, %s2577_s30  ;;  %p2582_p2 = scmp.lt.s32.totalorder %s3197_s12, %s3305_s28 }
 0xb98   : > { %p2583_p0 = scmp.lt.s32.totalorder %s2581_s27, %s2577_s30 }
 0xb99   : > { %p2579_p7 = pnand %p2578_p13, %p3306_p5 }
 0xb9a   : > { %p2584_p1 = por %p2583_p0, %p2582_p2 }
 0xb9b   : > { %p2580_p9 = pneg %p2579_p7 }
 0xb9d   : > { %p2585_p12 = pnand %p2584_p1, %p2580_p9 }
 0xb9f   : > { %2588 = shalt.err (!%p2585_p12)
}
 0xba0   : > { %s2659_s15 = smov 128   ;;  %s2660_s25 = smov 8  }
 0xba1   : > { %2228 = dma.vmem_to_hbm [thread:$0]  (%p3306_p5), %s3192_s11, 256, %s3197_s12, %s1778_s3, %s2659_s15, %s2659_s15, %s2660_s25  }
 0xba2 PF: > { %s3307_s17 = sld [smem:[#allocation20_spill]] }
 0xba3   : > { %s3308_s23 = sld [smem:[#allocation22_spill]] }
 0xba4   : > { %s3309_s14 = sld [smem:[#allocation21_spill]] }
 0xba8   : > { %s1806_s26 = sand.u32 1, %s3307_s17  }
 0xba9   : > { %p3310_p4 = scmp.ne.s32.totalorder %s3308_s23, 0  ;;  %s1807_s21 = scalar_lea.sflag [#allocation4], %s1806_s26 }
 0xbaa   : > { %p3311_p8 = scmp.ge.s32.totalorder %s3309_s14, 2 }
 0xbac   : > { %p2254_p11 = pnand %p3311_p8, %p3310_p4 }
 0xbae   : > { %p2255_p10 = pneg %p2254_p11 }
 0xbb0   : > { %2622 = dma.done.wait (%p2255_p10), %s1807_s21, 256  }
 0xbb1   : > { %2624 = vsyncadd (%p2255_p10), %s1807_s21, 4294967040  ;;  %s3312_s20 = sld [smem:[#allocation23_spill]]  ;;  %s3314_s17 = smov %s2631_s18 }
 0xbb2   : > { %s3313_s22 = sld [smem:[#allocation25_spill]]  ;;  %s3315_s18 = smov %s2635_s19 }
 0xbb7   : > { %p29_p3 = scmp.ge.s32.totalorder %s3312_s20, 4  }
 0xbb8   : > { %s3316_s19 = smov %s3313_s22 }
 0xbb9   :  { %31 = sbr.rel (!%p29_p3) target bundleno = 14 (0xe), region = 149 }
 0xbbe   :  { %1812 = vsyncpa [#allocation3], 1 }
 0xbbf   :  { %1814 = vsyncpa [#allocation3 + $0x1], 1 }
 0xbc0   :  { %1815 = vsyncpa [#allocation6], 1 }
 0xbc1   :  { %1817 = vsyncpa [#allocation6 + $0x1], 1 }
 0xbc2   :  { %1818 = vsyncpa [#allocation9], 1 }
 0xbc3   :  { %1819 = vsyncpa [#allocation12], 1 }
 0xbc4   :  { %1820 = vsyncpa [#allocation4], 1 }
 0xbc5   :  { %1822 = vsyncpa [#allocation4 + $0x1], 1 }

</bundles_post_ra>
